<compile_context>
chip_gen: v6e
topology: v6e:2x2x1
jax: 0.10.0
libtpu: 0.0.40
codegen_flags: <defaults>
</compile_context>

<pallas_src>
import functools
import math

import jax
import jax.numpy as jnp
from jax.experimental import pallas as pl
from jax.experimental.pallas import tpu as pltpu

# ----------------------------- config (small) -------------------------------
SEQ = 8
HIDDEN = 128
NUM_HEADS = 4
HEAD_SIZE = HIDDEN // NUM_HEADS           # 32
INTERMEDIATE = 4 * HIDDEN                 # 512
ROTARY_PCT = 0.25
ROTARY_DIM = int(HEAD_SIZE * ROTARY_PCT)  # 8 (even)
ROTARY_HALF = ROTARY_DIM // 2             # 4
ROPE_THETA = 10000.0
LN_EPS = 1e-5
USE_PARALLEL_RESIDUAL = True

_INV_SQRT2 = 1.0 / math.sqrt(2.0)


# ------------------------------ fused kernel --------------------------------
def _erf(x):
    # Abramowitz & Stegun 7.1.26 (|abs err| <= 1.5e-7) with an approx-EUP
    # reciprocal for the t = 1/(1+p|x|) divide.
    a1, a2, a3, a4, a5 = (0.254829592, -0.284496736, 1.421413741,
                          -1.453152027, 1.061405429)
    p = 0.3275911
    sgn = jnp.where(x >= 0.0, 1.0, -1.0)
    ax = jnp.abs(x)
    t = pl.reciprocal(1.0 + p * ax, approx=True)
    poly = ((((a5 * t + a4) * t + a3) * t + a2) * t + a1) * t
    return sgn * (1.0 - poly * jnp.exp(-ax * ax))


def _gelu_exact(x):
    return 0.5 * x * (1.0 + _erf(x * _INV_SQRT2))


def neox_layer_kernel(
    x_ref, cos_ref, sin1_ref, sin2_ref,
    ln1_w_ref, ln1_b_ref, ln2_w_ref, ln2_b_ref,
    qkv_w_ref, qkv_b_ref, dense_w_ref, dense_b_ref,
    fc1_w_ref, fc1_b_ref, fc2_w_ref, fc2_b_ref,
    o_ref,
    attn_cat_ref,                                   # VMEM scratch (S, H) f32
    *, eps, scale, num_heads, head_size, rotary_half, use_parallel_residual,
):
    x = x_ref[...]                                  # (S, H) lane-dense f32
    S, H = x.shape

    def bf16(v):
        return v.astype(jnp.bfloat16)

    def layer_norm(v, w, b):                        # stats kept in f32
        mu = jnp.mean(v, axis=-1, keepdims=True)
        c = v - mu
        var = jnp.mean(c * c, axis=-1, keepdims=True)
        return c * jax.lax.rsqrt(var + eps) * w + b

    # ---------------- attention branch ----------------
    attn_in = layer_norm(x, ln1_w_ref[...], ln1_b_ref[...])

    # Single fused QKV projection: (S,128) @ (128,384); q/k/v are 128-lane
    # aligned column slices (free).
    qkv = jnp.dot(bf16(attn_in), qkv_w_ref[...],
                  preferred_element_type=jnp.float32) + qkv_b_ref[...]
    q = qkv[:, 0:H]
    k = qkv[:, H:2 * H]
    v = qkv[:, 2 * H:3 * H]

    # NeoX RoPE via XLU lane rolls (no MXU perm matmul). sin tables are zero on
    # pass-through lanes, so roll wrap / cross-head garbage is masked out.
    cos = cos_ref[...]
    sin1 = sin1_ref[...]     # -sin on first rotary-half lanes, 0 elsewhere
    sin2 = sin2_ref[...]     # +sin on second rotary-half lanes, 0 elsewhere

    def rope(t):
        up = pltpu.roll(t, H - rotary_half, axis=1)     # up[i]   = t[i + half]
        down = pltpu.roll(t, rotary_half, axis=1)       # down[i] = t[i - half]
        return t * cos + up * sin1 + down * sin2

    q = rope(q) * scale        # softmax scale folded once into q
    k = rope(k)

    row = jax.lax.broadcasted_iota(jnp.int32, (S, S), 0)
    col = jax.lax.broadcasted_iota(jnp.int32, (S, S), 1)
    causal = col <= row

    # Per-head attention (tiny static unroll); head outputs land lane-dense in
    # a (S, H) scratch so the dense projection is ONE wide matmul.
    for h in range(num_heads):
        lo = h * head_size
        hi = lo + head_size
        qh = bf16(q[:, lo:hi])
        kh = bf16(k[:, lo:hi])
        vh = bf16(v[:, lo:hi])
        s = jax.lax.dot_general(qh, kh, (((1,), (1,)), ((), ())),
                                preferred_element_type=jnp.float32)   # (S,S) f32
        s = jnp.where(causal, s, -1e30)                               # f32 mask
        m = jnp.max(s, axis=-1, keepdims=True)
        p = jnp.exp(s - m)
        p = p * pl.reciprocal(jnp.sum(p, axis=-1, keepdims=True), approx=True)
        attn_cat_ref[:, lo:hi] = jnp.dot(bf16(p), vh,
                                         preferred_element_type=jnp.float32)

    attn_output = jnp.dot(bf16(attn_cat_ref[...]), dense_w_ref[...],
                          preferred_element_type=jnp.float32) + dense_b_ref[...]

    # ---------------- MLP branch + residual ----------------
    def mlp(v_in):
        h1 = jnp.dot(bf16(v_in), fc1_w_ref[...],
                     preferred_element_type=jnp.float32) + fc1_b_ref[...]
        h1 = _gelu_exact(h1)                                          # f32
        return jnp.dot(bf16(h1), fc2_w_ref[...],
                       preferred_element_type=jnp.float32) + fc2_b_ref[...]

    if use_parallel_residual:
        mlp_output = mlp(layer_norm(x, ln2_w_ref[...], ln2_b_ref[...]))
        out = mlp_output + attn_output + x
    else:
        attn_res = attn_output + x
        out = mlp(layer_norm(attn_res, ln2_w_ref[...], ln2_b_ref[...])) + attn_res

    o_ref[...] = out.astype(o_ref.dtype)


# ------------------------------ wrapper / glue -------------------------------
def _rope_tables(positions, num_heads=NUM_HEADS, head_size=HEAD_SIZE,
                 rotary_dim=ROTARY_DIM, base=ROPE_THETA):
    """Full-width (S, H) cos and masked-sin tables for roll-based NeoX RoPE."""
    S = positions.shape[0]
    half = rotary_dim // 2
    inv_freq = 1.0 / (base ** (jnp.arange(0, rotary_dim, 2, dtype=jnp.float32)
                               / rotary_dim))
    ang = positions.astype(jnp.float32)[:, None] * inv_freq[None, :]   # (S, half)
    cos = jnp.cos(ang)
    sin = jnp.sin(ang)
    pass_w = head_size - rotary_dim
    z_half = jnp.zeros((S, half), jnp.float32)
    z_pass = jnp.zeros((S, pass_w), jnp.float32)
    ones_pass = jnp.ones((S, pass_w), jnp.float32)
    cos_head = jnp.concatenate([cos, cos, ones_pass], axis=-1)          # (S, D)
    sin1_head = jnp.concatenate([-sin, z_half, z_pass], axis=-1)        # x[i+half] coeff
    sin2_head = jnp.concatenate([z_half, sin, z_pass], axis=-1)         # x[i-half] coeff
    tile = lambda a: jnp.tile(a, (1, num_heads))
    return tile(cos_head), tile(sin1_head), tile(sin2_head)


def _full_spec(a):
    n = a.ndim
    return pl.BlockSpec(a.shape, lambda: (0,) * n)


def gpt_neox_layer(position_ids, hidden_states, params):
    S, H = hidden_states.shape
    cos_f, sin1_f, sin2_f = _rope_tables(position_ids)

    # MXU operands in bf16 (cast weights once, outside the kernel).
    bw = lambda name: params[name].astype(jnp.bfloat16)

    inputs = (
        hidden_states, cos_f, sin1_f, sin2_f,
        params["ln1_w"].reshape(1, H), params["ln1_b"].reshape(1, H),
        params["ln2_w"].reshape(1, H), params["ln2_b"].reshape(1, H),
        bw("qkv_w"), params["qkv_b"].reshape(1, 3 * H),
        bw("dense_w"), params["dense_b"].reshape(1, H),
        bw("fc1_w"), params["fc1_b"].reshape(1, INTERMEDIATE),
        bw("fc2_w"), params["fc2_b"].reshape(1, H),
    )

    kernel = functools.partial(
        neox_layer_kernel,
        eps=LN_EPS,
        scale=HEAD_SIZE ** (-0.5),
        num_heads=NUM_HEADS,
        head_size=HEAD_SIZE,
        rotary_half=ROTARY_HALF,
        use_parallel_residual=USE_PARALLEL_RESIDUAL,
    )

    return pl.pallas_call(
        kernel,
        out_shape=jax.ShapeDtypeStruct((S, H), hidden_states.dtype),
        in_specs=[_full_spec(a) for a in inputs],
        out_specs=pl.BlockSpec((S, H), lambda: (0, 0)),
        scratch_shapes=[pltpu.VMEM((S, H), jnp.float32)],
    )(*inputs)


# --------------------------- pure-JAX reference ------------------------------
def apply_rope_neox(x, positions, rotary_dim=ROTARY_DIM, base=ROPE_THETA):
    half = rotary_dim // 2
    inv_freq = 1.0 / (base ** (jnp.arange(0, rotary_dim, 2, dtype=jnp.float32)
                               / rotary_dim))
    freqs = positions.astype(jnp.float32)[:, None] * inv_freq[None, :]
    cos = jnp.cos(freqs)[:, None, :]
    sin = jnp.sin(freqs)[:, None, :]
    x1 = x[..., :half]
    x2 = x[..., half:rotary_dim]
    x_pass = x[..., rotary_dim:]
    return jnp.concatenate([x1 * cos - x2 * sin, x2 * cos + x1 * sin, x_pass], -1)


def gpt_neox_layer_ref(position_ids, hidden_states, params):
    def ln(v, w, b):
        mu = jnp.mean(v, -1, keepdims=True)
        var = jnp.mean((v - mu) ** 2, -1, keepdims=True)
        return (v - mu) * jax.lax.rsqrt(var + LN_EPS) * w + b

    S, H = hidden_states.shape
    x = hidden_states
    attn_in = ln(x, params["ln1_w"], params["ln1_b"])
    qkv = attn_in @ params["qkv_w"] + params["qkv_b"]
    q, k, v = jnp.split(qkv, 3, -1)
    q = apply_rope_neox(q.reshape(S, NUM_HEADS, HEAD_SIZE), position_ids)
    k = apply_rope_neox(k.reshape(S, NUM_HEADS, HEAD_SIZE), position_ids)
    v = v.reshape(S, NUM_HEADS, HEAD_SIZE)
    q, k, v = (t.transpose(1, 0, 2) for t in (q, k, v))
    s = jnp.einsum("hqd,hkd->hqk", q, k) * HEAD_SIZE ** (-0.5)
    s = jnp.where(jnp.tril(jnp.ones((S, S), bool)), s, -1e30)
    o = jnp.einsum("hqk,hkd->hqd", jax.nn.softmax(s, -1), v)
    attn_out = o.transpose(1, 0, 2).reshape(S, H) @ params["dense_w"] + params["dense_b"]
    mlp_in = ln(x, params["ln2_w"], params["ln2_b"])
    h1 = jax.nn.gelu(mlp_in @ params["fc1_w"] + params["fc1_b"], approximate=False)
    mlp_out = h1 @ params["fc2_w"] + params["fc2_b"]
    return mlp_out + attn_out + x


# ----------------------------- param construction ---------------------------
def make_params(key):
    ks = jax.random.split(key, 8)
    s = 0.02
    return {
        "ln1_w": jnp.ones((HIDDEN,), jnp.float32),
        "ln1_b": jnp.zeros((HIDDEN,), jnp.float32),
        "ln2_w": jnp.ones((HIDDEN,), jnp.float32),
        "ln2_b": jnp.zeros((HIDDEN,), jnp.float32),
        "qkv_w": s * jax.random.normal(ks[0], (HIDDEN, 3 * HIDDEN), jnp.float32),
        "qkv_b": s * jax.random.normal(ks[1], (3 * HIDDEN,), jnp.float32),
        "dense_w": s * jax.random.normal(ks[2], (HIDDEN, HIDDEN), jnp.float32),
        "dense_b": s * jax.random.normal(ks[3], (HIDDEN,), jnp.float32),
        "fc1_w": s * jax.random.normal(ks[4], (HIDDEN, INTERMEDIATE), jnp.float32),
        "fc1_b": s * jax.random.normal(ks[5], (INTERMEDIATE,), jnp.float32),
        "fc2_w": s * jax.random.normal(ks[6], (INTERMEDIATE, HIDDEN), jnp.float32),
        "fc2_b": s * jax.random.normal(ks[7], (HIDDEN,), jnp.float32),
    }


if __name__ == "__main__":
    key = jax.random.PRNGKey(0)
    k_x, k_p = jax.random.split(key)
    params = make_params(k_p)
    hidden_states = jax.random.normal(k_x, (SEQ, HIDDEN), jnp.float32)
    position_ids = jnp.arange(SEQ, dtype=jnp.int32)

    out = jax.jit(gpt_neox_layer)(position_ids, hidden_states, params)
    out = jax.block_until_ready(out)
    assert out.shape == (SEQ, HIDDEN) and out.dtype == jnp.float32
    assert bool(jnp.all(jnp.isfinite(out)))

    ref = gpt_neox_layer_ref(position_ids, hidden_states, params)
    # Tolerance accounts for bf16 MXU operands + approx-EUP reciprocal (f32
    # accumulation / softmax / LN); observed error is ~1e-3 level.
    assert bool(jnp.allclose(out, ref, atol=5e-3, rtol=5e-3)), "mismatch vs reference"

    print("KERNEL_OK")
</pallas_src>

<mosaic_0001>
module attributes {stable_mosaic.version = 11 : i64} {
  func.func @neox_layer_kernel(%arg0: memref<8x128xf32, #tpu.memory_space<vmem>>, %arg1: memref<8x128xf32, #tpu.memory_space<vmem>>, %arg2: memref<8x128xf32, #tpu.memory_space<vmem>>, %arg3: memref<8x128xf32, #tpu.memory_space<vmem>>, %arg4: memref<1x128xf32, #tpu.memory_space<vmem>>, %arg5: memref<1x128xf32, #tpu.memory_space<vmem>>, %arg6: memref<1x128xf32, #tpu.memory_space<vmem>>, %arg7: memref<1x128xf32, #tpu.memory_space<vmem>>, %arg8: memref<128x384xbf16, #tpu.memory_space<vmem>>, %arg9: memref<1x384xf32, #tpu.memory_space<vmem>>, %arg10: memref<128x128xbf16, #tpu.memory_space<vmem>>, %arg11: memref<1x128xf32, #tpu.memory_space<vmem>>, %arg12: memref<128x512xbf16, #tpu.memory_space<vmem>>, %arg13: memref<1x512xf32, #tpu.memory_space<vmem>>, %arg14: memref<512x128xbf16, #tpu.memory_space<vmem>>, %arg15: memref<1x128xf32, #tpu.memory_space<vmem>>, %arg16: memref<8x128xf32, #tpu.memory_space<vmem>>, %arg17: memref<8x128xf32, #tpu.memory_space<vmem>>) attributes {dimension_semantics = [], scalar_prefetch = 0 : i64, scratch_operands = 1 : i64, tpu.core_type = #tpu.core_type<tc>} {
    %c0 = arith.constant 0 : index
    %c0_0 = arith.constant 0 : index
    %0 = vector.load %arg0[%c0, %c0_0] : memref<8x128xf32, #tpu.memory_space<vmem>>, vector<8x128xf32>
    %c0_1 = arith.constant 0 : index
    %c0_2 = arith.constant 0 : index
    %1 = vector.load %arg4[%c0_1, %c0_2] : memref<1x128xf32, #tpu.memory_space<vmem>>, vector<1x128xf32>
    %c0_3 = arith.constant 0 : index
    %c0_4 = arith.constant 0 : index
    %2 = vector.load %arg5[%c0_3, %c0_4] : memref<1x128xf32, #tpu.memory_space<vmem>>, vector<1x128xf32>
    %cst = arith.constant dense<0.000000e+00> : vector<8xf32>
    %3 = vector.multi_reduction <add>, %0, %cst [1] : vector<8x128xf32> to vector<8xf32>
    %4 = vector.shape_cast %3 : vector<8xf32> to vector<8x1xf32>
    %cst_5 = arith.constant 1.280000e+02 : f32
    %5 = vector.broadcast %cst_5 : f32 to vector<8x1xf32>
    %6 = arith.divf %4, %5 : vector<8x1xf32>
    %7 = vector.broadcast %6 : vector<8x1xf32> to vector<8x128xf32>
    %8 = arith.subf %0, %7 : vector<8x128xf32>
    %9 = arith.mulf %8, %8 : vector<8x128xf32>
    %cst_6 = arith.constant dense<0.000000e+00> : vector<8xf32>
    %10 = vector.multi_reduction <add>, %9, %cst_6 [1] : vector<8x128xf32> to vector<8xf32>
    %11 = vector.shape_cast %10 : vector<8xf32> to vector<8x1xf32>
    %cst_7 = arith.constant 1.280000e+02 : f32
    %12 = vector.broadcast %cst_7 : f32 to vector<8x1xf32>
    %13 = arith.divf %11, %12 : vector<8x1xf32>
    %cst_8 = arith.constant 9.99999974E-6 : f32
    %14 = vector.broadcast %cst_8 : f32 to vector<8x1xf32>
    %15 = arith.addf %13, %14 : vector<8x1xf32>
    %16 = math.rsqrt %15 : vector<8x1xf32>
    %17 = vector.broadcast %16 : vector<8x1xf32> to vector<8x128xf32>
    %18 = arith.mulf %8, %17 : vector<8x128xf32>
    %19 = vector.broadcast %1 : vector<1x128xf32> to vector<8x128xf32>
    %20 = arith.mulf %18, %19 : vector<8x128xf32>
    %21 = vector.broadcast %2 : vector<1x128xf32> to vector<8x128xf32>
    %22 = arith.addf %20, %21 : vector<8x128xf32>
    %23 = arith.truncf %22 : vector<8x128xf32> to vector<8x128xbf16>
    %c0_9 = arith.constant 0 : index
    %c0_10 = arith.constant 0 : index
    %24 = vector.load %arg8[%c0_9, %c0_10] : memref<128x384xbf16, #tpu.memory_space<vmem>>, vector<128x384xbf16>
    %cst_11 = arith.constant dense<0.000000e+00> : vector<8x384xf32>
    %25 = tpu.matmul %23, %24, %cst_11 {dimension_numbers = #tpu.dot_dimension_numbers<[1], [0], [0], [1], [0, 0, 1, 1], [], []>} : vector<8x128xbf16>, vector<128x384xbf16>, vector<8x384xf32> -> vector<8x384xf32>
    %c0_12 = arith.constant 0 : index
    %c0_13 = arith.constant 0 : index
    %26 = vector.load %arg9[%c0_12, %c0_13] : memref<1x384xf32, #tpu.memory_space<vmem>>, vector<1x384xf32>
    %27 = vector.broadcast %26 : vector<1x384xf32> to vector<8x384xf32>
    %28 = arith.addf %25, %27 : vector<8x384xf32>
    %29 = vector.extract_strided_slice %28 {offsets = [0, 0], sizes = [8, 128], strides = [1, 1]} : vector<8x384xf32> to vector<8x128xf32>
    %30 = vector.extract_strided_slice %28 {offsets = [0, 128], sizes = [8, 128], strides = [1, 1]} : vector<8x384xf32> to vector<8x128xf32>
    %31 = vector.extract_strided_slice %28 {offsets = [0, 256], sizes = [8, 128], strides = [1, 1]} : vector<8x384xf32> to vector<8x128xf32>
    %c0_14 = arith.constant 0 : index
    %c0_15 = arith.constant 0 : index
    %32 = vector.load %arg1[%c0_14, %c0_15] : memref<8x128xf32, #tpu.memory_space<vmem>>, vector<8x128xf32>
    %c0_16 = arith.constant 0 : index
    %c0_17 = arith.constant 0 : index
    %33 = vector.load %arg2[%c0_16, %c0_17] : memref<8x128xf32, #tpu.memory_space<vmem>>, vector<8x128xf32>
    %c0_18 = arith.constant 0 : index
    %c0_19 = arith.constant 0 : index
    %34 = vector.load %arg3[%c0_18, %c0_19] : memref<8x128xf32, #tpu.memory_space<vmem>>, vector<8x128xf32>
    %c124_i32 = arith.constant 124 : i32
    %35 = tpu.dynamic_rotate %29 by %c124_i32 dim 1 : vector<8x128xf32>, i32 -> vector<8x128xf32>
    %c4_i32 = arith.constant 4 : i32
    %36 = tpu.dynamic_rotate %29 by %c4_i32 dim 1 : vector<8x128xf32>, i32 -> vector<8x128xf32>
    %37 = arith.mulf %29, %32 : vector<8x128xf32>
    %38 = arith.mulf %35, %33 : vector<8x128xf32>
    %39 = arith.addf %37, %38 : vector<8x128xf32>
    %40 = arith.mulf %36, %34 : vector<8x128xf32>
    %41 = arith.addf %39, %40 : vector<8x128xf32>
    %cst_20 = arith.constant 0.176776692 : f32
    %42 = vector.broadcast %cst_20 : f32 to vector<8x128xf32>
    %43 = arith.mulf %41, %42 : vector<8x128xf32>
    %c124_i32_21 = arith.constant 124 : i32
    %44 = tpu.dynamic_rotate %30 by %c124_i32_21 dim 1 : vector<8x128xf32>, i32 -> vector<8x128xf32>
    %c4_i32_22 = arith.constant 4 : i32
    %45 = tpu.dynamic_rotate %30 by %c4_i32_22 dim 1 : vector<8x128xf32>, i32 -> vector<8x128xf32>
    %46 = arith.mulf %30, %32 : vector<8x128xf32>
    %47 = arith.mulf %44, %33 : vector<8x128xf32>
    %48 = arith.addf %46, %47 : vector<8x128xf32>
    %49 = arith.mulf %45, %34 : vector<8x128xf32>
    %50 = arith.addf %48, %49 : vector<8x128xf32>
    %51 = tpu.iota {dimensions = array<i32: 0>} : vector<8x8xi32>
    %52 = tpu.iota {dimensions = array<i32: 1>} : vector<8x8xi32>
    %53 = arith.cmpi sle, %52, %51 : vector<8x8xi32>
    %54 = vector.extract_strided_slice %43 {offsets = [0, 0], sizes = [8, 32], strides = [1, 1]} : vector<8x128xf32> to vector<8x32xf32>
    %55 = arith.truncf %54 : vector<8x32xf32> to vector<8x32xbf16>
    %56 = vector.extract_strided_slice %50 {offsets = [0, 0], sizes = [8, 32], strides = [1, 1]} : vector<8x128xf32> to vector<8x32xf32>
    %57 = arith.truncf %56 : vector<8x32xf32> to vector<8x32xbf16>
    %58 = vector.extract_strided_slice %31 {offsets = [0, 0], sizes = [8, 32], strides = [1, 1]} : vector<8x128xf32> to vector<8x32xf32>
    %59 = arith.truncf %58 : vector<8x32xf32> to vector<8x32xbf16>
    %cst_23 = arith.constant dense<0.000000e+00> : vector<8x8xf32>
    %60 = tpu.matmul %55, %57, %cst_23 {dimension_numbers = #tpu.dot_dimension_numbers<[1], [1], [0], [0], [0, 0, 1, 0], [], []>} : vector<8x32xbf16>, vector<8x32xbf16>, vector<8x8xf32> -> vector<8x8xf32>
    %cst_24 = arith.constant -1.000000e+30 : f32
    %61 = vector.broadcast %cst_24 : f32 to vector<8x8xf32>
    %62 = arith.select %53, %60, %61 : vector<8x8xi1>, vector<8x8xf32>
    %cst_25 = arith.constant dense<0xFF800000> : vector<8xf32>
    %63 = vector.multi_reduction <maximumf>, %62, %cst_25 [1] : vector<8x8xf32> to vector<8xf32>
    %64 = vector.shape_cast %63 : vector<8xf32> to vector<8x1xf32>
    %65 = vector.broadcast %64 : vector<8x1xf32> to vector<8x8xf32>
    %66 = arith.subf %62, %65 : vector<8x8xf32>
    %67 = math.exp %66 : vector<8x8xf32>
    %cst_26 = arith.constant dense<0.000000e+00> : vector<8xf32>
    %68 = vector.multi_reduction <add>, %67, %cst_26 [1] : vector<8x8xf32> to vector<8xf32>
    %69 = vector.shape_cast %68 : vector<8xf32> to vector<8x1xf32>
    %70 = tpu.reciprocal %69 {approx = true} : vector<8x1xf32> -> vector<8x1xf32>
    %71 = vector.broadcast %70 : vector<8x1xf32> to vector<8x8xf32>
    %72 = arith.mulf %67, %71 : vector<8x8xf32>
    %73 = arith.truncf %72 : vector<8x8xf32> to vector<8x8xbf16>
    %cst_27 = arith.constant dense<0.000000e+00> : vector<8x32xf32>
    %74 = tpu.matmul %73, %59, %cst_27 {dimension_numbers = #tpu.dot_dimension_numbers<[1], [0], [0], [1], [0, 0, 1, 1], [], []>} : vector<8x8xbf16>, vector<8x32xbf16>, vector<8x32xf32> -> vector<8x32xf32>
    %c0_28 = arith.constant 0 : index
    %c0_29 = arith.constant 0 : index
    %75 = vector.load %arg17[%c0_28, %c0_29] : memref<8x128xf32, #tpu.memory_space<vmem>>, vector<8x32xf32>
    tpu.vector_store %arg17[%c0_28, %c0_29], %74 {strides = array<i32>} : memref<8x128xf32, #tpu.memory_space<vmem>>, vector<8x32xf32>,
    %76 = vector.extract_strided_slice %43 {offsets = [0, 32], sizes = [8, 32], strides = [1, 1]} : vector<8x128xf32> to vector<8x32xf32>
    %77 = arith.truncf %76 : vector<8x32xf32> to vector<8x32xbf16>
    %78 = vector.extract_strided_slice %50 {offsets = [0, 32], sizes = [8, 32], strides = [1, 1]} : vector<8x128xf32> to vector<8x32xf32>
    %79 = arith.truncf %78 : vector<8x32xf32> to vector<8x32xbf16>
    %80 = vector.extract_strided_slice %31 {offsets = [0, 32], sizes = [8, 32], strides = [1, 1]} : vector<8x128xf32> to vector<8x32xf32>
    %81 = arith.truncf %80 : vector<8x32xf32> to vector<8x32xbf16>
    %cst_30 = arith.constant dense<0.000000e+00> : vector<8x8xf32>
    %82 = tpu.matmul %77, %79, %cst_30 {dimension_numbers = #tpu.dot_dimension_numbers<[1], [1], [0], [0], [0, 0, 1, 0], [], []>} : vector<8x32xbf16>, vector<8x32xbf16>, vector<8x8xf32> -> vector<8x8xf32>
    %cst_31 = arith.constant -1.000000e+30 : f32
    %83 = vector.broadcast %cst_31 : f32 to vector<8x8xf32>
    %84 = arith.select %53, %82, %83 : vector<8x8xi1>, vector<8x8xf32>
    %cst_32 = arith.constant dense<0xFF800000> : vector<8xf32>
    %85 = vector.multi_reduction <maximumf>, %84, %cst_32 [1] : vector<8x8xf32> to vector<8xf32>
    %86 = vector.shape_cast %85 : vector<8xf32> to vector<8x1xf32>
    %87 = vector.broadcast %86 : vector<8x1xf32> to vector<8x8xf32>
    %88 = arith.subf %84, %87 : vector<8x8xf32>
    %89 = math.exp %88 : vector<8x8xf32>
    %cst_33 = arith.constant dense<0.000000e+00> : vector<8xf32>
    %90 = vector.multi_reduction <add>, %89, %cst_33 [1] : vector<8x8xf32> to vector<8xf32>
    %91 = vector.shape_cast %90 : vector<8xf32> to vector<8x1xf32>
    %92 = tpu.reciprocal %91 {approx = true} : vector<8x1xf32> -> vector<8x1xf32>
    %93 = vector.broadcast %92 : vector<8x1xf32> to vector<8x8xf32>
    %94 = arith.mulf %89, %93 : vector<8x8xf32>
    %95 = arith.truncf %94 : vector<8x8xf32> to vector<8x8xbf16>
    %cst_34 = arith.constant dense<0.000000e+00> : vector<8x32xf32>
    %96 = tpu.matmul %95, %81, %cst_34 {dimension_numbers = #tpu.dot_dimension_numbers<[1], [0], [0], [1], [0, 0, 1, 1], [], []>} : vector<8x8xbf16>, vector<8x32xbf16>, vector<8x32xf32> -> vector<8x32xf32>
    %c0_35 = arith.constant 0 : index
    %c32 = arith.constant 32 : index
    %97 = vector.load %arg17[%c0_35, %c32] : memref<8x128xf32, #tpu.memory_space<vmem>>, vector<8x32xf32>
    tpu.vector_store %arg17[%c0_35, %c32], %96 {strides = array<i32>} : memref<8x128xf32, #tpu.memory_space<vmem>>, vector<8x32xf32>,
    %98 = vector.extract_strided_slice %43 {offsets = [0, 64], sizes = [8, 32], strides = [1, 1]} : vector<8x128xf32> to vector<8x32xf32>
    %99 = arith.truncf %98 : vector<8x32xf32> to vector<8x32xbf16>
    %100 = vector.extract_strided_slice %50 {offsets = [0, 64], sizes = [8, 32], strides = [1, 1]} : vector<8x128xf32> to vector<8x32xf32>
    %101 = arith.truncf %100 : vector<8x32xf32> to vector<8x32xbf16>
    %102 = vector.extract_strided_slice %31 {offsets = [0, 64], sizes = [8, 32], strides = [1, 1]} : vector<8x128xf32> to vector<8x32xf32>
    %103 = arith.truncf %102 : vector<8x32xf32> to vector<8x32xbf16>
    %cst_36 = arith.constant dense<0.000000e+00> : vector<8x8xf32>
    %104 = tpu.matmul %99, %101, %cst_36 {dimension_numbers = #tpu.dot_dimension_numbers<[1], [1], [0], [0], [0, 0, 1, 0], [], []>} : vector<8x32xbf16>, vector<8x32xbf16>, vector<8x8xf32> -> vector<8x8xf32>
    %cst_37 = arith.constant -1.000000e+30 : f32
    %105 = vector.broadcast %cst_37 : f32 to vector<8x8xf32>
    %106 = arith.select %53, %104, %105 : vector<8x8xi1>, vector<8x8xf32>
    %cst_38 = arith.constant dense<0xFF800000> : vector<8xf32>
    %107 = vector.multi_reduction <maximumf>, %106, %cst_38 [1] : vector<8x8xf32> to vector<8xf32>
    %108 = vector.shape_cast %107 : vector<8xf32> to vector<8x1xf32>
    %109 = vector.broadcast %108 : vector<8x1xf32> to vector<8x8xf32>
    %110 = arith.subf %106, %109 : vector<8x8xf32>
    %111 = math.exp %110 : vector<8x8xf32>
    %cst_39 = arith.constant dense<0.000000e+00> : vector<8xf32>
    %112 = vector.multi_reduction <add>, %111, %cst_39 [1] : vector<8x8xf32> to vector<8xf32>
    %113 = vector.shape_cast %112 : vector<8xf32> to vector<8x1xf32>
    %114 = tpu.reciprocal %113 {approx = true} : vector<8x1xf32> -> vector<8x1xf32>
    %115 = vector.broadcast %114 : vector<8x1xf32> to vector<8x8xf32>
    %116 = arith.mulf %111, %115 : vector<8x8xf32>
    %117 = arith.truncf %116 : vector<8x8xf32> to vector<8x8xbf16>
    %cst_40 = arith.constant dense<0.000000e+00> : vector<8x32xf32>
    %118 = tpu.matmul %117, %103, %cst_40 {dimension_numbers = #tpu.dot_dimension_numbers<[1], [0], [0], [1], [0, 0, 1, 1], [], []>} : vector<8x8xbf16>, vector<8x32xbf16>, vector<8x32xf32> -> vector<8x32xf32>
    %c0_41 = arith.constant 0 : index
    %c64 = arith.constant 64 : index
    %119 = vector.load %arg17[%c0_41, %c64] : memref<8x128xf32, #tpu.memory_space<vmem>>, vector<8x32xf32>
    tpu.vector_store %arg17[%c0_41, %c64], %118 {strides = array<i32>} : memref<8x128xf32, #tpu.memory_space<vmem>>, vector<8x32xf32>,
    %120 = vector.extract_strided_slice %43 {offsets = [0, 96], sizes = [8, 32], strides = [1, 1]} : vector<8x128xf32> to vector<8x32xf32>
    %121 = arith.truncf %120 : vector<8x32xf32> to vector<8x32xbf16>
    %122 = vector.extract_strided_slice %50 {offsets = [0, 96], sizes = [8, 32], strides = [1, 1]} : vector<8x128xf32> to vector<8x32xf32>
    %123 = arith.truncf %122 : vector<8x32xf32> to vector<8x32xbf16>
    %124 = vector.extract_strided_slice %31 {offsets = [0, 96], sizes = [8, 32], strides = [1, 1]} : vector<8x128xf32> to vector<8x32xf32>
    %125 = arith.truncf %124 : vector<8x32xf32> to vector<8x32xbf16>
    %cst_42 = arith.constant dense<0.000000e+00> : vector<8x8xf32>
    %126 = tpu.matmul %121, %123, %cst_42 {dimension_numbers = #tpu.dot_dimension_numbers<[1], [1], [0], [0], [0, 0, 1, 0], [], []>} : vector<8x32xbf16>, vector<8x32xbf16>, vector<8x8xf32> -> vector<8x8xf32>
    %cst_43 = arith.constant -1.000000e+30 : f32
    %127 = vector.broadcast %cst_43 : f32 to vector<8x8xf32>
    %128 = arith.select %53, %126, %127 : vector<8x8xi1>, vector<8x8xf32>
    %cst_44 = arith.constant dense<0xFF800000> : vector<8xf32>
    %129 = vector.multi_reduction <maximumf>, %128, %cst_44 [1] : vector<8x8xf32> to vector<8xf32>
    %130 = vector.shape_cast %129 : vector<8xf32> to vector<8x1xf32>
    %131 = vector.broadcast %130 : vector<8x1xf32> to vector<8x8xf32>
    %132 = arith.subf %128, %131 : vector<8x8xf32>
    %133 = math.exp %132 : vector<8x8xf32>
    %cst_45 = arith.constant dense<0.000000e+00> : vector<8xf32>
    %134 = vector.multi_reduction <add>, %133, %cst_45 [1] : vector<8x8xf32> to vector<8xf32>
    %135 = vector.shape_cast %134 : vector<8xf32> to vector<8x1xf32>
    %136 = tpu.reciprocal %135 {approx = true} : vector<8x1xf32> -> vector<8x1xf32>
    %137 = vector.broadcast %136 : vector<8x1xf32> to vector<8x8xf32>
    %138 = arith.mulf %133, %137 : vector<8x8xf32>
    %139 = arith.truncf %138 : vector<8x8xf32> to vector<8x8xbf16>
    %cst_46 = arith.constant dense<0.000000e+00> : vector<8x32xf32>
    %140 = tpu.matmul %139, %125, %cst_46 {dimension_numbers = #tpu.dot_dimension_numbers<[1], [0], [0], [1], [0, 0, 1, 1], [], []>} : vector<8x8xbf16>, vector<8x32xbf16>, vector<8x32xf32> -> vector<8x32xf32>
    %c0_47 = arith.constant 0 : index
    %c96 = arith.constant 96 : index
    %141 = vector.load %arg17[%c0_47, %c96] : memref<8x128xf32, #tpu.memory_space<vmem>>, vector<8x32xf32>
    tpu.vector_store %arg17[%c0_47, %c96], %140 {strides = array<i32>} : memref<8x128xf32, #tpu.memory_space<vmem>>, vector<8x32xf32>,
    %c0_48 = arith.constant 0 : index
    %c0_49 = arith.constant 0 : index
    %142 = vector.load %arg17[%c0_48, %c0_49] : memref<8x128xf32, #tpu.memory_space<vmem>>, vector<8x128xf32>
    %143 = arith.truncf %142 : vector<8x128xf32> to vector<8x128xbf16>
    %c0_50 = arith.constant 0 : index
    %c0_51 = arith.constant 0 : index
    %144 = vector.load %arg10[%c0_50, %c0_51] : memref<128x128xbf16, #tpu.memory_space<vmem>>, vector<128x128xbf16>
    %cst_52 = arith.constant dense<0.000000e+00> : vector<8x128xf32>
    %145 = tpu.matmul %143, %144, %cst_52 {dimension_numbers = #tpu.dot_dimension_numbers<[1], [0], [0], [1], [0, 0, 1, 1], [], []>} : vector<8x128xbf16>, vector<128x128xbf16>, vector<8x128xf32> -> vector<8x128xf32>
    %c0_53 = arith.constant 0 : index
    %c0_54 = arith.constant 0 : index
    %146 = vector.load %arg11[%c0_53, %c0_54] : memref<1x128xf32, #tpu.memory_space<vmem>>, vector<1x128xf32>
    %147 = vector.broadcast %146 : vector<1x128xf32> to vector<8x128xf32>
    %148 = arith.addf %145, %147 : vector<8x128xf32>
    %c0_55 = arith.constant 0 : index
    %c0_56 = arith.constant 0 : index
    %149 = vector.load %arg6[%c0_55, %c0_56] : memref<1x128xf32, #tpu.memory_space<vmem>>, vector<1x128xf32>
    %c0_57 = arith.constant 0 : index
    %c0_58 = arith.constant 0 : index
    %150 = vector.load %arg7[%c0_57, %c0_58] : memref<1x128xf32, #tpu.memory_space<vmem>>, vector<1x128xf32>
    %cst_59 = arith.constant dense<0.000000e+00> : vector<8xf32>
    %151 = vector.multi_reduction <add>, %0, %cst_59 [1] : vector<8x128xf32> to vector<8xf32>
    %152 = vector.shape_cast %151 : vector<8xf32> to vector<8x1xf32>
    %cst_60 = arith.constant 1.280000e+02 : f32
    %153 = vector.broadcast %cst_60 : f32 to vector<8x1xf32>
    %154 = arith.divf %152, %153 : vector<8x1xf32>
    %155 = vector.broadcast %154 : vector<8x1xf32> to vector<8x128xf32>
    %156 = arith.subf %0, %155 : vector<8x128xf32>
    %157 = arith.mulf %156, %156 : vector<8x128xf32>
    %cst_61 = arith.constant dense<0.000000e+00> : vector<8xf32>
    %158 = vector.multi_reduction <add>, %157, %cst_61 [1] : vector<8x128xf32> to vector<8xf32>
    %159 = vector.shape_cast %158 : vector<8xf32> to vector<8x1xf32>
    %cst_62 = arith.constant 1.280000e+02 : f32
    %160 = vector.broadcast %cst_62 : f32 to vector<8x1xf32>
    %161 = arith.divf %159, %160 : vector<8x1xf32>
    %cst_63 = arith.constant 9.99999974E-6 : f32
    %162 = vector.broadcast %cst_63 : f32 to vector<8x1xf32>
    %163 = arith.addf %161, %162 : vector<8x1xf32>
    %164 = math.rsqrt %163 : vector<8x1xf32>
    %165 = vector.broadcast %164 : vector<8x1xf32> to vector<8x128xf32>
    %166 = arith.mulf %156, %165 : vector<8x128xf32>
    %167 = vector.broadcast %149 : vector<1x128xf32> to vector<8x128xf32>
    %168 = arith.mulf %166, %167 : vector<8x128xf32>
    %169 = vector.broadcast %150 : vector<1x128xf32> to vector<8x128xf32>
    %170 = arith.addf %168, %169 : vector<8x128xf32>
    %171 = arith.truncf %170 : vector<8x128xf32> to vector<8x128xbf16>
    %c0_64 = arith.constant 0 : index
    %c0_65 = arith.constant 0 : index
    %172 = vector.load %arg12[%c0_64, %c0_65] : memref<128x512xbf16, #tpu.memory_space<vmem>>, vector<128x512xbf16>
    %cst_66 = arith.constant dense<0.000000e+00> : vector<8x512xf32>
    %173 = tpu.matmul %171, %172, %cst_66 {dimension_numbers = #tpu.dot_dimension_numbers<[1], [0], [0], [1], [0, 0, 1, 1], [], []>} : vector<8x128xbf16>, vector<128x512xbf16>, vector<8x512xf32> -> vector<8x512xf32>
    %c0_67 = arith.constant 0 : index
    %c0_68 = arith.constant 0 : index
    %174 = vector.load %arg13[%c0_67, %c0_68] : memref<1x512xf32, #tpu.memory_space<vmem>>, vector<1x512xf32>
    %175 = vector.broadcast %174 : vector<1x512xf32> to vector<8x512xf32>
    %176 = arith.addf %173, %175 : vector<8x512xf32>
    %cst_69 = arith.constant 5.000000e-01 : f32
    %177 = vector.broadcast %cst_69 : f32 to vector<8x512xf32>
    %178 = arith.mulf %177, %176 : vector<8x512xf32>
    %cst_70 = arith.constant 0.707106769 : f32
    %179 = vector.broadcast %cst_70 : f32 to vector<8x512xf32>
    %180 = arith.mulf %176, %179 : vector<8x512xf32>
    %cst_71 = arith.constant 0.000000e+00 : f32
    %181 = vector.broadcast %cst_71 : f32 to vector<8x512xf32>
    %182 = arith.cmpf oge, %180, %181 : vector<8x512xf32>
    %cst_72 = arith.constant 1.000000e+00 : f32
    %cst_73 = arith.constant -1.000000e+00 : f32
    %183 = vector.broadcast %cst_72 : f32 to vector<8x512xf32>
    %184 = vector.broadcast %cst_73 : f32 to vector<8x512xf32>
    %185 = arith.select %182, %183, %184 : vector<8x512xi1>, vector<8x512xf32>
    %186 = math.absf %180 : vector<8x512xf32>
    %cst_74 = arith.constant 0.327591091 : f32
    %187 = vector.broadcast %cst_74 : f32 to vector<8x512xf32>
    %188 = arith.mulf %187, %186 : vector<8x512xf32>
    %cst_75 = arith.constant 1.000000e+00 : f32
    %189 = vector.broadcast %cst_75 : f32 to vector<8x512xf32>
    %190 = arith.addf %189, %188 : vector<8x512xf32>
    %191 = tpu.reciprocal %190 {approx = true} : vector<8x512xf32> -> vector<8x512xf32>
    %cst_76 = arith.constant 1.06140542 : f32
    %192 = vector.broadcast %cst_76 : f32 to vector<8x512xf32>
    %193 = arith.mulf %192, %191 : vector<8x512xf32>
    %cst_77 = arith.constant -1.45315206 : f32
    %194 = vector.broadcast %cst_77 : f32 to vector<8x512xf32>
    %195 = arith.addf %193, %194 : vector<8x512xf32>
    %196 = arith.mulf %195, %191 : vector<8x512xf32>
    %cst_78 = arith.constant 1.42141378 : f32
    %197 = vector.broadcast %cst_78 : f32 to vector<8x512xf32>
    %198 = arith.addf %196, %197 : vector<8x512xf32>
    %199 = arith.mulf %198, %191 : vector<8x512xf32>
    %cst_79 = arith.constant -0.284496725 : f32
    %200 = vector.broadcast %cst_79 : f32 to vector<8x512xf32>
    %201 = arith.addf %199, %200 : vector<8x512xf32>
    %202 = arith.mulf %201, %191 : vector<8x512xf32>
    %cst_80 = arith.constant 0.254829586 : f32
    %203 = vector.broadcast %cst_80 : f32 to vector<8x512xf32>
    %204 = arith.addf %202, %203 : vector<8x512xf32>
    %205 = arith.mulf %204, %191 : vector<8x512xf32>
    %cst_81 = arith.constant 0.000000e+00 : f32
    %206 = vector.broadcast %cst_81 : f32 to vector<8x512xf32>
    %207 = arith.subf %206, %186 : vector<8x512xf32>
    %208 = arith.mulf %207, %186 : vector<8x512xf32>
    %209 = math.exp %208 : vector<8x512xf32>
    %210 = arith.mulf %205, %209 : vector<8x512xf32>
    %cst_82 = arith.constant 1.000000e+00 : f32
    %211 = vector.broadcast %cst_82 : f32 to vector<8x512xf32>
    %212 = arith.subf %211, %210 : vector<8x512xf32>
    %213 = arith.mulf %185, %212 : vector<8x512xf32>
    %cst_83 = arith.constant 1.000000e+00 : f32
    %214 = vector.broadcast %cst_83 : f32 to vector<8x512xf32>
    %215 = arith.addf %214, %213 : vector<8x512xf32>
    %216 = arith.mulf %178, %215 : vector<8x512xf32>
    %217 = arith.truncf %216 : vector<8x512xf32> to vector<8x512xbf16>
    %c0_84 = arith.constant 0 : index
    %c0_85 = arith.constant 0 : index
    %218 = vector.load %arg14[%c0_84, %c0_85] : memref<512x128xbf16, #tpu.memory_space<vmem>>, vector<512x128xbf16>
    %cst_86 = arith.constant dense<0.000000e+00> : vector<8x128xf32>
    %219 = tpu.matmul %217, %218, %cst_86 {dimension_numbers = #tpu.dot_dimension_numbers<[1], [0], [0], [1], [0, 0, 1, 1], [], []>} : vector<8x512xbf16>, vector<512x128xbf16>, vector<8x128xf32> -> vector<8x128xf32>
    %c0_87 = arith.constant 0 : index
    %c0_88 = arith.constant 0 : index
    %220 = vector.load %arg15[%c0_87, %c0_88] : memref<1x128xf32, #tpu.memory_space<vmem>>, vector<1x128xf32>
    %221 = vector.broadcast %220 : vector<1x128xf32> to vector<8x128xf32>
    %222 = arith.addf %219, %221 : vector<8x128xf32>
    %223 = arith.addf %222, %148 : vector<8x128xf32>
    %224 = arith.addf %223, %0 : vector<8x128xf32>
    %c0_89 = arith.constant 0 : index
    %c0_90 = arith.constant 0 : index
    %225 = vector.load %arg16[%c0_89, %c0_90] : memref<8x128xf32, #tpu.memory_space<vmem>>, vector<8x128xf32>
    tpu.vector_store %arg16[%c0_89, %c0_90], %224 {strides = array<i32>} : memref<8x128xf32, #tpu.memory_space<vmem>>, vector<8x128xf32>,
    return
  }
}

</mosaic_0001>

<bundles_post_ra>
// kernel: tile.29
= control target key start
LH: loop header
LB: loop body
LE: loop exit
PB: predicated region body
PF: predicated region fallthrough
CT: control target
= control target key end

     0   :  { %vm43_vm0 = vcmask 1047556   ;;  %vm45_vm1 = vcmask 261120   ;;  %s94_s22 = smov 32   ;;  %s95_s25 = smov 64   ;;  %vm55_vm2 = vcmask 1048320   ;;  %vm65_vm3 = vcmask 785920   ;;  %s147_s0 = inlined_call_operand.vmem [shape: f32[8,4,32], index: 0, kind: input, shape index: {}]   ;;  %s148_s1 = inlined_call_operand.vmem [shape: f32[8,128], index: 1, kind: output, shape index: {}]  }
   0x1   :  { %v83_v0 = vld [vmem:[%s147_s0 + $0x1c] sm:$0xf]  ;;  %v84_v1 = vld [vmem:[%s147_s0 + $0x18] sm:$0xf]  ;;  %v85_v2 = vld [vmem:[%s147_s0 + $0x14] sm:$0xf] }
   0x2   :  { %9 = vst [vmem:[#allocation0 + $0x38] sm:$0xf] %v83_v0  ;;  %14 = vst [vmem:[#allocation0 + $0x30] sm:$0xf] %v84_v1  ;;  %v86_v3 = vld [vmem:[%s147_s0 + $0x10] sm:$0xf] }
   0x3   :  { %19 = vst [vmem:[#allocation0 + $0x28] sm:$0xf] %v85_v2  ;;  %v87_v4 = vld [vmem:[%s147_s0 + $0xc] sm:$0xf]  ;;  %v88_v5 = vld [vmem:[%s147_s0 + $0x8] sm:$0xf] }
   0x4   :  { %24 = vst [vmem:[#allocation0 + $0x20] sm:$0xf] %v86_v3  ;;  %29 = vst [vmem:[#allocation0 + $0x18] sm:$0xf] %v87_v4  ;;  %v89_v6 = vld [vmem:[%s147_s0 + $0x4] sm:$0xf] }
   0x5   :  { %34 = vst [vmem:[#allocation0 + $0x10] sm:$0xf] %v88_v5  ;;  %v39_v7 = vld [vmem:[%s147_s0] sm:$0xf]  ;;  %38 = vst [vmem:[#allocation0 + $0x8] sm:$0xf] %v89_v6 }
   0x6   :  { %40 = vst [vmem:[#allocation0] sm:$0xf] %v39_v7  ;;  %s93_s0 = smov 96   ;;  %vm75_vm4 = vcmask 523520  }
   0xb   :  { %v50_v8 = vld [vmem:[#allocation0 + $0x3] ss:$8 sm:$0xf0]   ;;  %v60_v9 = vld [vmem:[#allocation0 + $0x2] ss:$8 sm:$0xf0]  }
   0xc   :  { %v70_v14 = vld [vmem:[#allocation0 + $0x1] ss:$8 sm:$0xf0]   ;;  %v42_v17 = vld [vmem:[#allocation0] ss:$8 sm:$0xf0]  }
   0xd   :  { %v48_v10 = vld [vmem:[#allocation0 + $0x3] ss:$8 sm:$0xf]   ;;  %v58_v11 = vld [vmem:[#allocation0 + $0x2] ss:$8 sm:$0xf]  }
   0xe   :  { %v52_v12 = vsel %vm43_vm0, %v50_v8, %v48_v10  ;;  %v68_v13 = vld [vmem:[#allocation0 + $0x1] ss:$8 sm:$0xf]   ;;  %v41_v16 = vld [vmem:[#allocation0] ss:$8 sm:$0xf]   ;;  %v62_v18 = vsel %vm43_vm0, %v60_v9, %v58_v11 }
   0xf   :  { %53 = vrot.lane.b32.xlu0 %v52_v12, %s93_s0  ;;  %v72_v15 = vsel %vm43_vm0, %v70_v14, %v68_v13  ;;  %v44_v19 = vsel %vm43_vm0, %v42_v17, %v41_v16 }
  0x10   :  { %73 = vrot.lane.b32.xlu1 %v72_v15, %s94_s22  ;;  %46 = vst.msk [vmem:[%s148_s1] sm:$0xff] %vm45_vm1, %v44_v19  }
  0x13   :  { %63 = vrot.lane.b32.xlu0 %v62_v18, %s95_s25 }
  0x81   :  { %v54_v20 = vpop.permute.xlu0 %53  }
  0x82   :  { %56 = vst.msk [vmem:[%s148_s1] sm:$0xff] %vm55_vm2, %v54_v20   ;;  %v74_v21 = vpop.permute.xlu1 %73  }
  0x85   :  { %v64_v22 = vpop.permute.xlu0 %63  }
  0x86   :  { %66 = vst.msk [vmem:[%s148_s1] sm:$0xff] %vm65_vm3, %v64_v22  }
  0x87   :  { %76 = vst.msk [vmem:[%s148_s1] sm:$0xff] %vm75_vm4, %v74_v21  }

// kernel: gpt_neox_layer.1
= control target key start
LH: loop header
LB: loop body
LE: loop exit
PB: predicated region body
PF: predicated region fallthrough
CT: control target
= control target key end

     0   :  { %s2766_s0 = inlined_call_operand.vmem [shape: f32[8,128], index: 0, kind: input, shape index: {}]   ;;  %s2767_s1 = inlined_call_operand.vmem [shape: f32[8,128], index: 1, kind: input, shape index: {}]   ;;  %s2768_s2 = inlined_call_operand.vmem [shape: f32[8,128], index: 2, kind: input, shape index: {}]   ;;  %s2769_s3 = inlined_call_operand.vmem [shape: f32[8,128], index: 3, kind: input, shape index: {}]   ;;  %s2770_s4 = inlined_call_operand.vmem [shape: f32[1,128], index: 4, kind: input, shape index: {}]   ;;  %s2771_s5 = inlined_call_operand.vmem [shape: f32[1,128], index: 5, kind: input, shape index: {}]   ;;  %s2772_s6 = inlined_call_operand.vmem [shape: f32[1,128], index: 6, kind: input, shape index: {}]   ;;  %s2773_s7 = inlined_call_operand.vmem [shape: f32[1,128], index: 7, kind: input, shape index: {}]   ;;  %s2774_s8 = inlined_call_operand.vmem [shape: bf16[128,384], index: 8, kind: input, shape index: {}]   ;;  %s2775_s9 = inlined_call_operand.vmem [shape: f32[1,384], index: 9, kind: input, shape index: {}]   ;;  %s2776_s10 = inlined_call_operand.vmem [shape: bf16[128,128], index: 10, kind: input, shape index: {}]   ;;  %s2777_s11 = inlined_call_operand.vmem [shape: f32[1,128], index: 11, kind: input, shape index: {}]   ;;  %s2778_s12 = inlined_call_operand.vmem [shape: bf16[128,512], index: 12, kind: input, shape index: {}]   ;;  %s2779_s13 = inlined_call_operand.vmem [shape: f32[1,512], index: 13, kind: input, shape index: {}]   ;;  %s2780_s14 = inlined_call_operand.vmem [shape: bf16[512,128], index: 14, kind: input, shape index: {}]   ;;  %s2781_s15 = inlined_call_operand.vmem [shape: f32[1,128], index: 15, kind: input, shape index: {}]   ;;  %s2782_s16 = inlined_call_operand.hbm [shape: f32[8,128], index: 16, kind: output, shape index: {}]  }
   0x1   :  { %2784 = sst [smem:[#allocation6_spill]] %s2766_s0 }
   0x2   :  { %s2785_s23 = sld [smem:[#allocation6_spill]]  ;;  %v2016_v1 = vld [vmem:[%s2774_s8 + $0xac] ss:$12 sps:$4 sm:$0xff]   ;;  %v2018_v2 = vld [vmem:[%s2774_s8 + $0xa8] ss:$12 sps:$4 sm:$0xff]   ;;  %v2193_v3 = vmov 0.0  }
   0x3   :  { %1918 = vmatprep.subr.bf16.mxu1 %v2193_v3  ;;  %v2019_v4 = vld [vmem:[%s2774_s8 + $0xb0] ss:$12 sps:$4 sm:$0xff]   ;;  %v2020_v5 = vld [vmem:[%s2774_s8 + $0x94] ss:$12 sps:$4 sm:$0xff]   ;;  %262 = vmatprep.subr.bf16.mxu0 %v2016_v1  ;;  %v2023_v7 = vld [vmem:[%s2774_s8 + $0x98] ss:$12 sps:$4 sm:$0xff]  }
   0x4   :  { %v2022_v6 = vld [vmem:[%s2774_s8 + $0x90] ss:$12 sps:$4 sm:$0xff]   ;;  %263 = vmatpush1.bf16.msra.mxu0 %v2018_v2  ;;  %1919 = vmatpush3.bf16.msra.mxu1 %v2019_v4 }
   0x5   :  { %264 = vmatprep.subr.bf16.mxu0 %v2020_v5  ;;  %1920 = vmatprep.subr.bf16.mxu1 %v2193_v3 }
   0x8   :  { %v55_v0 = vld [vmem:[%s2785_s23] sm:$0xff]  ;;  %265 = vmatpush1.bf16.msra.mxu0 %v2022_v6  ;;  %1921 = vmatpush3.bf16.msra.mxu1 %v2023_v7 }
   0x9   :  { %58 = vadd.xlane.f32.xlu0 %v55_v0  ;;  %1922 = vmatprep.subr.bf16.mxu1 %v2193_v3 }
   0xa   :  { %21 = vsyncpa [#allocation4], 0  ;;  %v2024_v12 = vld [vmem:[%s2774_s8 + $0x7c] ss:$12 sps:$4 sm:$0xff]   ;;  %v2026_v13 = vld [vmem:[%s2774_s8 + $0x78] ss:$12 sps:$4 sm:$0xff]   ;;  %v119_v41 = vlaneseq }
   0xb   :  { %v2027_v14 = vld [vmem:[%s2774_s8 + $0x80] ss:$12 sps:$4 sm:$0xff]   ;;  %266 = vmatprep.subr.bf16.mxu0 %v2024_v12  ;;  %v2028_v15 = vld [vmem:[%s2774_s8 + $0x64] ss:$12 sps:$4 sm:$0xff]   ;;  %v2031_v17 = vld [vmem:[%s2774_s8 + $0x68] ss:$12 sps:$4 sm:$0xff]  }
   0xc   :  { %267 = vmatpush1.bf16.msra.mxu0 %v2026_v13  ;;  %1923 = vmatpush3.bf16.msra.mxu1 %v2027_v14  ;;  %v2030_v16 = vld [vmem:[%s2774_s8 + $0x60] ss:$12 sps:$4 sm:$0xff]   ;;  %v2034_v19 = vld [vmem:[%s2774_s8 + $0x48] ss:$12 sps:$4 sm:$0xff]   ;;  %v2035_v20 = vld [vmem:[%s2774_s8 + $0x50] ss:$12 sps:$4 sm:$0xff]  }
   0xd   :  { %1924 = vmatprep.subr.bf16.mxu1 %v2193_v3  ;;  %v2032_v18 = vld [vmem:[%s2774_s8 + $0x4c] ss:$12 sps:$4 sm:$0xff]   ;;  %268 = vmatprep.subr.bf16.mxu0 %v2028_v15  ;;  %v2036_v21 = vld [vmem:[%s2774_s8 + $0x34] ss:$12 sps:$4 sm:$0xff]   ;;  %v2194_v22 = vmov 0   ;;  %vm2195_vm0 = vmmov 0  }
   0xe   :  { %294 = vmatprep.mubr.bf16.mxu0 %v2194_v22  ;;  %1934 = vmatprep.mubr.msk.bf16.mxu1 %vm2195_vm0, %v2193_v3  ;;  %v2038_v23 = vld [vmem:[%s2774_s8 + $0x30] ss:$12 sps:$4 sm:$0xff]   ;;  %v2039_v24 = vld [vmem:[%s2774_s8 + $0x38] ss:$12 sps:$4 sm:$0xff]   ;;  %v2043_v27 = vld [vmem:[%s2774_s8 + $0x20] ss:$12 sps:$4 sm:$0xff]  }
   0xf   :  { %v2040_v25 = vld [vmem:[%s2774_s8 + $0x1c] ss:$12 sps:$4 sm:$0xff]   ;;  %v2042_v26 = vld [vmem:[%s2774_s8 + $0x18] ss:$12 sps:$4 sm:$0xff]   ;;  %v2046_v29 = vld [vmem:[%s2774_s8] ss:$12 sps:$4 sm:$0xff]  }
  0x10   :  { %269 = vmatpush1.bf16.msra.mxu0 %v2030_v16  ;;  %1925 = vmatpush3.bf16.msra.mxu1 %v2031_v17  ;;  %v2044_v28 = vld [vmem:[%s2774_s8 + $0x4] ss:$12 sps:$4 sm:$0xff]   ;;  %v2047_v30 = vld [vmem:[%s2774_s8 + $0x8] ss:$12 sps:$4 sm:$0xff]   ;;  %v1730_v35 = vld [vmem:[%s2770_s4] ss:$0 sm:$0xff] }
  0x11   :  { %270 = vmatprep.subr.bf16.mxu0 %v2032_v18  ;;  %1926 = vmatprep.subr.bf16.mxu1 %v2193_v3  ;;  %v1731_v37 = vld [vmem:[%s2771_s5] ss:$0 sm:$0xff]  ;;  %v2389_v42 = vshrl.u32 %v119_v41, 7  ;;  %s2196_s5 = smov 124   ;;  %vm373_vm1 = vcmask 261120   ;;  %vm437_vm2 = vcmask 1043456  }
  0x12   :  { %v117_v44 = vld [vmem:[%s2775_s9] sm:$0x7]  ;;  %s2197_s9 = smov 4   ;;  %vm421_vm4 = vcmask 64512   ;;  %vm600_vm7 = vcmask 523520   ;;  %vm717_vm8 = vcmask 785920  }
  0x13   :  { %v121_v43 = vsub.s32 0, %v2389_v42  ;;  %v125_v45 = vsub.s32 1, %v2389_v42  ;;  %v344_v58 = vld [vmem:[%s2768_s2] sm:$0xff]  ;;  %s2199_s2 = smov 64   ;;  %vm834_vm9 = vcmask 1048320  }
  0x14   :  { %271 = vmatpush1.bf16.msra.mxu0 %v2034_v19  ;;  %1927 = vmatpush3.bf16.msra.mxu1 %v2035_v20  ;;  %v343_v61 = vld [vmem:[%s2767_s1] sm:$0xff]  ;;  %s2198_s1 = smov 96  }
  0x15   :  { %272 = vmatprep.subr.bf16.mxu0 %v2036_v21  ;;  %1928 = vmatprep.subr.bf16.mxu1 %v2193_v3  ;;  %v122_v46 = vrot.slane %v117_v44, %v121_v43  ;;  %v126_v47 = vrot.slane %v117_v44, %v125_v45  ;;  %v345_v63 = vld [vmem:[%s2769_s3] sm:$0xff]  ;;  %v2422_v21 = vand.u32 127, %v119_v41  ;;  %s2200_s3 = smov 32  }
  0x17   :  { %vm369_vm3 = vcmp.le.s32.totalorder %v2422_v21, %v2389_v42 }
  0x18   :  { %273 = vmatpush1.bf16.msra.mxu0 %v2038_v23  ;;  %1929 = vmatpush3.bf16.msra.mxu1 %v2039_v24 }
  0x19   :  { %274 = vmatprep.subr.bf16.mxu0 %v2040_v25  ;;  %1930 = vmatprep.subr.bf16.mxu1 %v2193_v3 }
  0x1c   :  { %275 = vmatpush1.bf16.msra.mxu0 %v2042_v26  ;;  %1931 = vmatpush3.bf16.msra.mxu1 %v2043_v27 }
  0x1d   :  { %276 = vmatprep.subr.bf16.mxu0 %v2044_v28  ;;  %1932 = vmatprep.subr.bf16.mxu1 %v2193_v3 }
  0x20   :  { %277 = vmatpush1.bf16.msra.mxu0 %v2046_v29  ;;  %1933 = vmatpush3.bf16.msra.mxu1 %v2047_v30 }
  0x21   :  { %1938 = vmatprep.subr.bf16.mxu1 %v2193_v3  ;;  %1962 = vmatprep.subr.bf16.mxu0 %v2193_v3 }
  0x92   :  { %v59_v8 = vpop.xlane.xlu0 %58 }
  0x93   :  { %v61_v9 = vmul.f32 0.0078125, %v59_v8 }
  0x95   :  { %v62_v10 = vsub.f32 %v55_v0, %v61_v9  ;;  %v129_v0 = vsub.s32 2, %v2389_v42 }
  0x97   :  { %v63_v11 = vmul.f32 %v62_v10, %v62_v10  ;;  %v130_v7 = vrot.slane %v117_v44, %v129_v0 }
  0x99   :  { %64 = vadd.xlane.f32.xlu0 %v63_v11 }
 0x122   :  { %v65_v31 = vpop.xlane.xlu0 %64 }
 0x123   :  { %v66_v32 = vmul.f32 0.0078125, %v65_v31 }
 0x125   :  { %v67_v33 = vadd.f32 1e-05, %v66_v32 }
 0x127   :  { %2136 = vrsqrt.f32 %v67_v33 }
 0x134   :  { %v2137_v34 = vpop.eup %2136 }
 0x135   :  { %v2379_v36 = vmul.f32 %v2137_v34, %v62_v10 }
 0x137   :  { %v76_v38 = vmul.f32 %v1730_v35, %v2379_v36 }
 0x139   :  { %v83_v39 = vadd.f32 %v1731_v37, %v76_v38 }
 0x13b   :  { %v84_v40 = vpack.c.bf16 %v83_v39, %v83_v39 }
 0x13d   :  { %295 = vmatmul.mubr.bf16.vlgmr.msra.gmra.mxu0 %v84_v40  ;;  %1935 = vmatmul.mubr.bf16.vlgmr.msra.gmra.mxu1 %v84_v40 }
 0x13e   :  { %1940 = vmatprep.mubr.msk.bf16.mxu1 %vm2195_vm0, %v2193_v3  ;;  %1964 = vmatprep.mubr.msk.bf16.mxu0 %vm2195_vm0, %v2193_v3 }
 0x1fd   :  { %v296_v48 = vpop.f32.mrf.mxu0  ;;  %v337_v49 = vpop.f32.mrf.mxu1 }
 0x1fe   :  { %v297_v50 = vadd.f32 %v296_v48, %v122_v46  ;;  %v338_v14 = vadd.f32 %v337_v49, %v130_v7 }
 0x1ff   :  { %v298_v51 = vpop.f32.mrf.mxu0  ;;  %v1936_v52 = vpop.f32.mrf.mxu1 }
 0x200   :  { %v299_v53 = vadd.f32 %v298_v51, %v126_v47  ;;  %346 = vrot.lane.b32.xlu0 %v297_v50, %s2196_s5  ;;  %v350_v8 = vmul.f32 %v343_v61, %v297_v50  ;;  %v2414_v18 = vpack.c.bf16 %v338_v14, %v338_v14 }
 0x201   :  { %v300_v54 = vpop.f32.mrf.mxu0  ;;  %v340_v55 = vpop.f32.mrf.mxu1 }
 0x202   :  { %356 = vrot.lane.b32.xlu1 %v299_v53, %s2196_s5  ;;  %v360_v1 = vmul.f32 %v343_v61, %v299_v53  ;;  %v439_v20 = vsel %vm437_vm2, %v2414_v18, 0 }
 0x203   :  { %v301_v56 = vpop.f32.mrf.mxu0  ;;  %v1937_v57 = vpop.f32.mrf.mxu1 }
 0x206   :  { %358 = vrot.lane.b32.xlu1 %v299_v53, %s2197_s9 }
 0x20a   :  { %348 = vrot.lane.b32.xlu1 %v297_v50, %s2197_s9 }
 0x272   :  { %v347_v62 = vpop.permute.xlu0 %346 }
 0x273   :  { %v351_v4 = vmul.f32 %v347_v62, %v344_v58 }
 0x274   :  { %v357_v59 = vpop.permute.xlu1 %356 }
 0x275   :  { %v361_v60 = vmul.f32 %v357_v59, %v344_v58  ;;  %v352_v11 = vadd.f32 %v351_v4, %v350_v8 }
 0x277   :  { %v362_v5 = vadd.f32 %v361_v60, %v360_v1 }
 0x278   :  { %v359_v2 = vpop.permute.xlu1 %358 }
 0x279   :  { %v363_v6 = vmul.f32 %v359_v2, %v345_v63 }
 0x27b   :  { %v364_v9 = vadd.f32 %v363_v6, %v362_v5 }
 0x27c   :  { %v349_v10 = vpop.permute.xlu1 %348 }
 0x27d   :  { %v371_v12 = vpack.c.bf16 %v364_v9, %v364_v9  ;;  %v353_v13 = vmul.f32 %v349_v10, %v345_v63 }
 0x27f   :  { %v354_v15 = vadd.f32 %v353_v13, %v352_v11  ;;  %v378_v16 = vsel %vm373_vm1, %v371_v12, 0 }
 0x280   :  { %1939 = vmatpush3.bf16.xpose.msra.mxu1 %v378_v16 }
 0x281   :  { %v355_v17 = vmul.f32 0.17677669, %v354_v15  ;;  %1944 = vmatprep.subr.bf16.mxu1 %v2193_v3 }
 0x283   :  { %v370_v19 = vpack.c.bf16 %v355_v17, %v355_v17 }
 0x287   :  { %1941 = vmatmul.mubr.msk.bf16.vlgmr.msra.gmra.mxu1 %vm373_vm1, %v370_v19 }
 0x288   :  { %1945 = vmatpush3.bf16.msra.mxu1 %v439_v20  ;;  %1946 = vmatprep.mubr.msk.bf16.mxu1 %vm2195_vm0, %v2193_v3 }
 0x289   :  { %1950 = vmatprep.subr.bf16.mxu1 %v2193_v3 }
 0x347   :  { %v414_v23 = vpop.f32.mrf.mxu1 }
 0x348   :  { %v420_v24 = vsel %vm369_vm3, %v414_v23, -1e+30 }
 0x349   :  { %v1942_v25 = vpop.f32.mrf.mxu1  ;;  %v422_v26 = vsel %vm421_vm4, %v420_v24, -inf }
 0x34a   :  { %423 = vmax.xlane.f32.xlu1 %v422_v26 }
 0x34b   :  { %v417_v27 = vpop.f32.mrf.mxu1 }
 0x34d   :  { %v1943_v28 = vpop.f32.mrf.mxu1 }
 0x35b   :  { %486 = vrot.lane.b32.xlu1 %v371_v12, %s2198_s1 }
 0x35f   :  { %604 = vrot.lane.b32.xlu1 %v371_v12, %s2199_s2 }
 0x363   :  { %602 = vrot.lane.b32.xlu1 %v370_v19, %s2199_s2 }
 0x367   :  { %721 = vrot.lane.b32.xlu1 %v371_v12, %s2200_s3 }
 0x36b   :  { %719 = vrot.lane.b32.xlu1 %v370_v19, %s2200_s3 }
 0x3d3   :  { %v424_v29 = vpop.xlane.xlu1 %423 }
 0x3d4   :  { %v425_v30 = vsub.f32 %v420_v24, %v424_v29 }
 0x3d6   :  { %v426_v31 = vmul.f32 1.442695, %v425_v30 }
 0x3d7   :  { %v487_v32 = vpop.permute.xlu1 %486 }
 0x3d8   :  { %2138 = vpow2.f32 %v426_v31  ;;  %v492_v49 = vsel %vm373_vm1, %v487_v32, 0 }
 0x3db   :  { %v605_v33 = vpop.permute.xlu1 %604 }
 0x3dc   :  { %v610_v34 = vsel %vm373_vm1, %v605_v33, 0 }
 0x3dd   :  { %1963 = vmatpush3.bf16.xpose.msra.mxu0 %v610_v34 }
 0x3de   :  { %1974 = vmatprep.subr.bf16.mxu0 %v2193_v3 }
 0x3df   :  { %v603_v35 = vpop.permute.xlu1 %602 }
 0x3e3   :  { %v722_v37 = vpop.permute.xlu1 %721 }
 0x3e4   :  { %v727_v38 = vsel %vm373_vm1, %v722_v37, 0  ;;  %1965 = vmatmul.mubr.msk.bf16.vlgmr.msra.gmra.mxu0 %vm373_vm1, %v603_v35 }
 0x3e5   :  { %v2139_v39 = vpop.eup %2138  ;;  %1975 = vmatpush3.bf16.xpose.msra.mxu0 %v727_v38  ;;  %1976 = vmatprep.mubr.msk.bf16.mxu0 %vm2195_vm0, %v2193_v3 }
 0x3e6   :  { %v428_v40 = vsel %vm421_vm4, %v2139_v39, 0.0  ;;  %1986 = vmatprep.subr.bf16.mxu0 %v2193_v3 }
 0x3e7   :  { %429 = vadd.xlane.f32.xlu0 %v428_v40  ;;  %v720_v41 = vpop.permute.xlu1 %719 }
 0x3ec   :  { %1977 = vmatmul.mubr.msk.bf16.vlgmr.msra.gmra.mxu0 %vm373_vm1, %v720_v41 }
 0x3ed   :  { %2002 = vmatprep.mubr.msk.bf16.mxu0 %vm2195_vm0, %v2193_v3 }
 0x3fd   :  { %483 = vrot.lane.b32.xlu0 %v370_v19, %s2198_s1 }
 0x470   :  { %v430_v44 = vpop.xlane.xlu0 %429 }
 0x471   :  { %2140 = vrcp.f32 %v430_v44  ;;  %v2050_v44 = vld [vmem:[%s2778_s12 + $0xe4] ss:$16 sps:$4 sm:$0xff]  }
 0x474   :  { %v484_v50 = vpop.permute.xlu0 %483 }
 0x47e   :  { %v2141_v46 = vpop.eup %2140 }
 0x47f   :  { %v432_v47 = vmul.f32 %v2141_v46, %v2139_v39 }
 0x481   :  { %v433_v48 = vpack.c.bf16 %v432_v47, %v432_v47 }
 0x483   :  { %1947 = vmatmul.mubr.msk.bf16.vlgmr.msra.gmra.mxu1 %vm421_vm4, %v433_v48 }
 0x484   :  { %1951 = vmatpush3.bf16.xpose.msra.mxu1 %v492_v49  ;;  %1952 = vmatprep.mubr.msk.bf16.mxu1 %vm2195_vm0, %v2193_v3  ;;  %v2048_v49 = vld [vmem:[%s2778_s12 + $0xe0] ss:$16 sps:$4 sm:$0xff]  }
 0x485   :  { %1956 = vmatprep.subr.bf16.mxu1 %v2193_v3 }
 0x48b   :  { %1953 = vmatmul.mubr.msk.bf16.vlgmr.msra.gmra.mxu1 %vm373_vm1, %v484_v50 }
 0x48c   :  { %1958 = vmatprep.mubr.msk.bf16.mxu1 %vm2195_vm0, %v2193_v3 }
 0x4a4   :  { %v646_v51 = vpop.f32.mrf.mxu0 }
 0x4a5   :  { %v652_v52 = vsel %vm369_vm3, %v646_v51, -1e+30  ;;  %v2053_v51 = vld [vmem:[%s2778_s12 + $0xc4] ss:$16 sps:$4 sm:$0xff]  }
 0x4a6   :  { %v1966_v53 = vpop.f32.mrf.mxu0  ;;  %v653_v54 = vsel %vm421_vm4, %v652_v52, -inf }
 0x4a7   :  { %654 = vmax.xlane.f32.xlu0 %v653_v54  ;;  %v2056_v53 = vld [vmem:[%s2778_s12 + $0xa4] ss:$16 sps:$4 sm:$0xff]   ;;  %v2054_v54 = vld [vmem:[%s2778_s12 + $0xa0] ss:$16 sps:$4 sm:$0xff]  }
 0x4a8   :  { %v649_v55 = vpop.f32.mrf.mxu0 }
 0x4a9   :  { %v2059_v55 = vld [vmem:[%s2778_s12 + $0x84] ss:$16 sps:$4 sm:$0xff]  }
 0x4aa   :  { %v1967_v56 = vpop.f32.mrf.mxu0 }
 0x4ab   :  { %v2057_v56 = vld [vmem:[%s2778_s12 + $0x80] ss:$16 sps:$4 sm:$0xff]  }
 0x4ac   :  { %v763_v57 = vpop.f32.mrf.mxu0 }
 0x4ad   :  { %v769_v58 = vsel %vm369_vm3, %v763_v57, -1e+30  ;;  %v2062_v57 = vld [vmem:[%s2778_s12 + $0x64] ss:$16 sps:$4 sm:$0xff]  }
 0x4ae   :  { %v1978_v59 = vpop.f32.mrf.mxu0  ;;  %v770_v60 = vsel %vm421_vm4, %v769_v58, -inf }
 0x4af   :  { %771 = vmax.xlane.f32.xlu0 %v770_v60  ;;  %v2065_v59 = vld [vmem:[%s2778_s12 + $0x44] ss:$16 sps:$4 sm:$0xff]   ;;  %v2063_v60 = vld [vmem:[%s2778_s12 + $0x40] ss:$16 sps:$4 sm:$0xff]  }
 0x4b0   :  { %v766_v61 = vpop.f32.mrf.mxu0 }
 0x4b1   :  { %v2068_v61 = vld [vmem:[%s2778_s12 + $0x24] ss:$16 sps:$4 sm:$0xff]  }
 0x4b2   :  { %v1979_v62 = vpop.f32.mrf.mxu0 }
 0x4b3   :  { %v1773_v62 = vld [vmem:[%s2772_s6] ss:$0 sm:$0xff]  ;;  %s2202_s6 = smov [#allocation3]  }
 0x4b4   :  { %s1722_s26 = sshll.u32 %s2202_s6, 4  ;;  %s1723_s26 = int_to_ptr.vmem [resolvable:$true] %s1722_s26 }
 0x4b5   :  { %p2176_p1 = scmp.lt.s32.totalorder %s1723_s26, %s1723_s26 }
 0x530   :  { %v655_v63 = vpop.xlane.xlu0 %654 }
 0x531   :  { %v656_v1 = vsub.f32 %v652_v52, %v655_v63  ;;  %v2051_v52 = vld [vmem:[%s2778_s12 + $0xc0] ss:$16 sps:$4 sm:$0xff]  }
 0x532   :  { %v2066_v63 = vld [vmem:[%s2778_s12 + $0x20] ss:$16 sps:$4 sm:$0xff]  }
 0x533   :  { %v657_v2 = vmul.f32 1.442695, %v656_v1  ;;  %v2071_v1 = vld [vmem:[%s2778_s12 + $0x4] ss:$16 sps:$4 sm:$0xff]  }
 0x535   :  { %2142 = vpow2.f32 %v657_v2  ;;  %v957_v2 = vmul.f32 %v1773_v62, %v2379_v36  ;;  %v2072_v36 = vld [vmem:[%s2780_s14 + $0x78] sm:$0xff]  }
 0x538   :  { %v772_v4 = vpop.xlane.xlu0 %771 }
 0x539   :  { %v773_v5 = vsub.f32 %v769_v58, %v772_v4  ;;  %v2060_v58 = vld [vmem:[%s2778_s12 + $0x60] ss:$16 sps:$4 sm:$0xff]  }
 0x53a   :  { %v1774_v4 = vld [vmem:[%s2773_s7] ss:$0 sm:$0xff] }
 0x53b   :  { %v774_v6 = vmul.f32 1.442695, %v773_v5  ;;  %v2069_v5 = vld [vmem:[%s2778_s12] ss:$16 sps:$4 sm:$0xff]  }
 0x53d   :  { %2144 = vpow2.f32 %v774_v6  ;;  %v964_v6 = vadd.f32 %v1774_v4, %v957_v2 }
 0x542   :  { %v2143_v7 = vpop.eup %2142 }
 0x543   :  { %v475_v8 = vpop.f32.mrf.mxu1  ;;  %v659_v9 = vsel %vm421_vm4, %v2143_v7, 0.0 }
 0x544   :  { %481 = vst.msk [vmem:[#allocation2] sm:$0xff] %vm373_vm1, %v475_v8  ;;  %660 = vadd.xlane.f32.xlu0 %v659_v9  ;;  %v2073_v8 = vld [vmem:[%s2780_s14 + $0x38] sm:$0xff]   ;;  %v2074_v9 = vld [vmem:[%s2780_s14 + $0x70] sm:$0xff]  }
 0x545   :  { %v1948_v10 = vpop.f32.mrf.mxu1 }
 0x546   :  { %v2075_v10 = vld [vmem:[%s2780_s14 + $0x30] sm:$0xff]  }
 0x547   :  { %v478_v11 = vpop.f32.mrf.mxu1 }
 0x548   :  { %v2076_v11 = vld [vmem:[%s2780_s14 + $0x68] sm:$0xff]  }
 0x549   :  { %v1949_v12 = vpop.f32.mrf.mxu1 }
 0x54a   :  { %v2145_v17 = vpop.eup %2144  ;;  %v2077_v12 = vld [vmem:[%s2780_s14 + $0x28] sm:$0xff]  }
 0x54b   :  { %v528_v13 = vpop.f32.mrf.mxu1  ;;  %v776_v23 = vsel %vm421_vm4, %v2145_v17, 0.0 }
 0x54c   :  { %v534_v14 = vsel %vm369_vm3, %v528_v13, -1e+30  ;;  %v2078_v13 = vld [vmem:[%s2780_s14 + $0x60] sm:$0xff]  }
 0x54d   :  { %v1954_v15 = vpop.f32.mrf.mxu1  ;;  %v535_v16 = vsel %vm421_vm4, %v534_v14, -inf }
 0x54e   :  { %536 = vmax.xlane.f32.xlu1 %v535_v16  ;;  %v2080_v15 = vld [vmem:[%s2780_s14 + $0x58] sm:$0xff]  }
 0x54f   :  { %v531_v19 = vpop.f32.mrf.mxu1  ;;  %v2081_v16 = vld [vmem:[%s2780_s14 + $0x18] sm:$0xff]  }
 0x550   :  { %v2083_v19 = vld [vmem:[%s2780_s14 + $0x10] sm:$0xff]  }
 0x551   :  { %v1955_v20 = vpop.f32.mrf.mxu1 }
 0x552   :  { %777 = vadd.xlane.f32.xlu1 %v776_v23  ;;  %v2084_v20 = vld [vmem:[%s2780_s14 + $0x48] sm:$0xff]  }
 0x553   :  { %v2085_v23 = vld [vmem:[%s2780_s14 + $0x8] sm:$0xff]  }
 0x55a   :  { %548 = vrot.lane.b32.xlu0 %v2414_v18, %s2198_s1 }
 0x5cd   :  { %v661_v24 = vpop.xlane.xlu0 %660 }
 0x5d1   :  { %v549_v25 = vpop.permute.xlu0 %548 }
 0x5d2   :  { %v554_v26 = vsel %vm437_vm2, %v549_v25, 0  ;;  %v2087_v25 = vld [vmem:[%s2780_s14] sm:$0xff]  }
 0x5d3   :  { %1957 = vmatpush3.bf16.msra.mxu1 %v554_v26  ;;  %v2088_v26 = vld [vmem:[%s2776_s10 + $0x38] sm:$0xff]  }
 0x5d4   :  { %1968 = vmatprep.subr.bf16.mxu1 %v2193_v3  ;;  %1987 = vmatpush3.bf16.msra.mxu0 %v2088_v26 }
 0x5d5   :  { %1988 = vmatprep.subr.bf16.mxu0 %v2193_v3 }
 0x5d7   :  { %v537_v21 = vpop.xlane.xlu1 %536 }
 0x5d8   :  { %v538_v27 = vsub.f32 %v534_v14, %v537_v21  ;;  %v2079_v14 = vld [vmem:[%s2780_s14 + $0x20] sm:$0xff]   ;;  %v2089_v21 = vld [vmem:[%s2776_s10 + $0x30] sm:$0xff]  }
 0x5d9   :  { %1989 = vmatpush3.bf16.msra.mxu0 %v2089_v21 }
 0x5da   :  { %v539_v28 = vmul.f32 1.442695, %v538_v27  ;;  %1990 = vmatprep.subr.bf16.mxu0 %v2193_v3  ;;  %v2090_v27 = vld [vmem:[%s2776_s10 + $0x28] sm:$0xff]  }
 0x5db   :  { %v778_v31 = vpop.xlane.xlu1 %777 }
 0x5dc   :  { %2146 = vpow2.f32 %v539_v28  ;;  %v2091_v28 = vld [vmem:[%s2776_s10 + $0x20] sm:$0xff]  }
 0x5dd   :  { %1991 = vmatpush3.bf16.msra.mxu0 %v2090_v27 }
 0x5de   :  { %1992 = vmatprep.subr.bf16.mxu0 %v2193_v3 }
 0x5e1   :  { %1993 = vmatpush3.bf16.msra.mxu0 %v2091_v28 }
 0x5e2   :  { %1994 = vmatprep.subr.bf16.mxu0 %v2193_v3 }
 0x5e9   :  { %v2147_v29 = vpop.eup %2146 }
 0x5ea   :  { %v541_v30 = vsel %vm421_vm4, %v2147_v29, 0.0 }
 0x5eb   :  { %542 = vadd.xlane.f32.xlu1 %v541_v30  ;;  %v2093_v30 = vld [vmem:[%s2776_s10 + $0x10] sm:$0xff]  }
 0x5fc   :  { %665 = vrot.lane.b32.xlu1 %v2414_v18, %s2199_s2 }
 0x600   :  { %782 = vrot.lane.b32.xlu1 %v2414_v18, %s2200_s3 }
 0x674   :  { %v543_v32 = vpop.xlane.xlu1 %542 }
 0x675   :  { %2148 = vrcp.f32 %v543_v32 }
 0x676   :  { %2150 = vrcp.f32 %v661_v24  ;;  %v2086_v24 = vld [vmem:[%s2780_s14 + $0x40] sm:$0xff]  }
 0x677   :  { %2152 = vrcp.f32 %v778_v31 }
 0x678   :  { %v666_v35 = vpop.permute.xlu1 %665 }
 0x679   :  { %v671_v39 = vsel %vm437_vm2, %v666_v35, 0 }
 0x67c   :  { %v783_v40 = vpop.permute.xlu1 %782 }
 0x67d   :  { %v788_v47 = vsel %vm437_vm2, %v783_v40, 0 }
 0x682   :  { %v2149_v33 = vpop.eup %2148 }
 0x683   :  { %v545_v34 = vmul.f32 %v2149_v33, %v2147_v29  ;;  %v2151_v38 = vpop.eup %2150  ;;  %v2092_v29 = vld [vmem:[%s2776_s10 + $0x18] sm:$0xff]  }
 0x684   :  { %v663_v18 = vmul.f32 %v2151_v38, %v2143_v7  ;;  %v2153_v46 = vpop.eup %2152  ;;  %v2545_v7 = vpack.c.bf16 %v964_v6, %v964_v6  ;;  %1995 = vmatpush3.bf16.msra.mxu0 %v2092_v29  ;;  %v2098_v38 = vld [vmem:[%s2778_s12 + $0xec] ss:$16 sps:$4 sm:$0xff]  }
 0x685   :  { %v546_v37 = vpack.c.bf16 %v545_v34, %v545_v34  ;;  %v780_v48 = vmul.f32 %v2153_v46, %v2145_v17  ;;  %v2082_v17 = vld [vmem:[%s2780_s14 + $0x50] sm:$0xff]   ;;  %1996 = vmatprep.subr.bf16.mxu0 %v2193_v3  ;;  %v2094_v34 = vld [vmem:[%s2776_s10 + $0x8] sm:$0xff]  }
 0x686   :  { %v664_v41 = vpack.c.bf16 %v663_v18, %v663_v18 }
 0x687   :  { %1959 = vmatmul.mubr.msk.bf16.vlgmr.msra.gmra.mxu1 %vm421_vm4, %v546_v37  ;;  %v781_v50 = vpack.c.bf16 %v780_v48, %v780_v48  ;;  %v2095_v37 = vld [vmem:[%s2776_s10] sm:$0xff]  }
 0x688   :  { %1969 = vmatpush3.bf16.msra.mxu1 %v671_v39  ;;  %1970 = vmatprep.mubr.msk.bf16.mxu1 %vm2195_vm0, %v2193_v3 }
 0x689   :  { %1980 = vmatprep.subr.bf16.mxu1 %v2193_v3  ;;  %1997 = vmatpush3.bf16.msra.mxu0 %v2093_v30 }
 0x68a   :  { %1998 = vmatprep.subr.bf16.mxu0 %v2193_v3 }
 0x68d   :  { %1999 = vmatpush3.bf16.msra.mxu0 %v2094_v34 }
 0x68e   :  { %2000 = vmatprep.subr.bf16.mxu0 %v2193_v3 }
 0x68f   :  { %1971 = vmatmul.mubr.msk.bf16.vlgmr.msra.gmra.mxu1 %vm421_vm4, %v664_v41 }
 0x690   :  { %1981 = vmatpush3.bf16.msra.mxu1 %v788_v47  ;;  %1982 = vmatprep.mubr.msk.bf16.mxu1 %vm2195_vm0, %v2193_v3  ;;  %v2636_v3 = vld [vmem:[%s2779_s13] sm:$0xf] }
 0x691   :  { %1180 = vmatprep.subr.bf16.mxu1 %v2050_v44  ;;  %2001 = vmatpush3.bf16.msra.mxu0 %v2095_v37 }
 0x692   :  { %1221 = vmatprep.subr.bf16.mxu0 %v2098_v38 }
 0x697   :  { %1983 = vmatmul.mubr.msk.bf16.vlgmr.msra.gmra.mxu1 %vm421_vm4, %v781_v50  ;;  %v1007_v50 = vrot.slane %v2636_v3, %v125_v45 }
 0x698   :  { %1181 = vmatpush1.bf16.msra.mxu1 %v2048_v49  ;;  %1212 = vmatprep.mubr.bf16.mxu1 %v2194_v22  ;;  %v1003_v49 = vrot.slane %v2636_v3, %v121_v43 }
 0x699   :  { %1182 = vmatprep.subr.bf16.mxu1 %v2053_v51 }
 0x69c   :  { %1183 = vmatpush1.bf16.msra.mxu1 %v2051_v52 }
 0x69d   :  { %1184 = vmatprep.subr.bf16.mxu1 %v2056_v53 }
 0x6a0   :  { %1185 = vmatpush1.bf16.msra.mxu1 %v2054_v54 }
 0x6a1   :  { %1186 = vmatprep.subr.bf16.mxu1 %v2059_v55 }
 0x6a4   :  { %1187 = vmatpush1.bf16.msra.mxu1 %v2057_v56 }
 0x6a5   :  { %1188 = vmatprep.subr.bf16.mxu1 %v2062_v57 }
 0x6a8   :  { %1189 = vmatpush1.bf16.msra.mxu1 %v2060_v58 }
 0x6a9   :  { %1190 = vmatprep.subr.bf16.mxu1 %v2065_v59 }
 0x6ac   :  { %1191 = vmatpush1.bf16.msra.mxu1 %v2063_v60 }
 0x6ad   :  { %1192 = vmatprep.subr.bf16.mxu1 %v2068_v61 }
 0x6b0   :  { %1193 = vmatpush1.bf16.msra.mxu1 %v2066_v63 }
 0x6b1   :  { %1194 = vmatprep.subr.bf16.mxu1 %v2071_v1 }
 0x6b4   :  { %1195 = vmatpush1.bf16.msra.mxu1 %v2069_v5 }
 0x6b5   :  { %1874 = vmatprep.subr.bf16.mxu1 %v2072_v36 }
 0x6b7   :  { %1213 = vmatmul.mubr.bf16.vlgmr.msra.gmra.mxu1 %v2545_v7 }
 0x6b8   :  { %1875 = vmatpush3.bf16.msra.mxu1 %v2073_v8 }
 0x6b9   :  { %1876 = vmatprep.subr.bf16.mxu1 %v2074_v9 }
 0x6bc   :  { %1877 = vmatpush3.bf16.msra.mxu1 %v2075_v10 }
 0x6bd   :  { %1878 = vmatprep.subr.bf16.mxu1 %v2076_v11 }
 0x6c0   :  { %1879 = vmatpush3.bf16.msra.mxu1 %v2077_v12 }
 0x6c1   :  { %1880 = vmatprep.subr.bf16.mxu1 %v2078_v13 }
 0x6c4   :  { %1881 = vmatpush3.bf16.msra.mxu1 %v2079_v14 }
 0x6c5   :  { %1882 = vmatprep.subr.bf16.mxu1 %v2080_v15 }
 0x6c8   :  { %1883 = vmatpush3.bf16.msra.mxu1 %v2081_v16 }
 0x6c9   :  { %1884 = vmatprep.subr.bf16.mxu1 %v2082_v17 }
 0x6cc   :  { %1885 = vmatpush3.bf16.msra.mxu1 %v2083_v19 }
 0x6cd   :  { %1886 = vmatprep.subr.bf16.mxu1 %v2084_v20 }
 0x6d0   :  { %1887 = vmatpush3.bf16.msra.mxu1 %v2085_v23 }
 0x6d1   :  { %1888 = vmatprep.subr.bf16.mxu1 %v2086_v24 }
 0x6d4   :  { %1889 = vmatpush3.bf16.msra.mxu1 %v2087_v25 }
 0x747   :  { %v590_v31 = vpop.f32.mrf.mxu1 }
 0x748   :  { %597 = vrot.lane.b32.xlu0 %v590_v31, %s2200_s3 }
 0x749   :  { %v1960_v32 = vpop.f32.mrf.mxu1 }
 0x74b   :  { %v593_v33 = vpop.f32.mrf.mxu1 }
 0x74c   :  { %v2201_v33 = vmov -1.0  }
 0x74d   :  { %v1961_v35 = vpop.f32.mrf.mxu1 }
 0x74f   :  { %v707_v39 = vpop.f32.mrf.mxu1 }
 0x750   :  { %714 = vrot.lane.b32.xlu1 %v707_v39, %s2199_s2 }
 0x751   :  { %v1972_v18 = vpop.f32.mrf.mxu1 }
 0x753   :  { %v710_v40 = vpop.f32.mrf.mxu1 }
 0x755   :  { %v1973_v41 = vpop.f32.mrf.mxu1 }
 0x757   :  { %v824_v44 = vpop.f32.mrf.mxu1 }
 0x758   :  { %831 = vrot.lane.b32.xlu0 %v824_v44, %s2198_s1 }
 0x759   :  { %v1984_v46 = vpop.f32.mrf.mxu1 }
 0x75b   :  { %v827_v47 = vpop.f32.mrf.mxu1 }
 0x75d   :  { %v1985_v48 = vpop.f32.mrf.mxu1 }
 0x777   :  { %v1214_v51 = vpop.f32.mrf.mxu1 }
 0x778   :  { %v1215_v52 = vadd.f32 %v1214_v51, %v1003_v49 }
 0x779   :  { %v1216_v53 = vpop.f32.mrf.mxu1 }
 0x77a   :  { %v1266_v54 = vmul.f32 0.70710677, %v1215_v52  ;;  %v1217_v55 = vadd.f32 %v1216_v53, %v1007_v50  ;;  %v1262_v41 = vmul.f32 0.5, %v1215_v52  ;;  %v2096_v52 = vld [vmem:[%s2778_s12 + $0xe8] ss:$16 sps:$4 sm:$0xff]  }
 0x77b   :  { %v1218_v56 = vpop.f32.mrf.mxu1 }
 0x77c   :  { %v1278_v57 = vand.u32 2147483647, %v1266_v54  ;;  %v1267_v58 = vmul.f32 0.70710677, %v1217_v55  ;;  %vm1270_vm5 = vcmp.ge.f32.partialorder %v1266_v54, 0.0  ;;  %v1263_v44 = vmul.f32 0.5, %v1217_v55 }
 0x77d   :  { %v1219_v59 = vpop.f32.mrf.mxu1  ;;  %v1274_v34 = vsel %vm1270_vm5, 1.0, %v2201_v33 }
 0x77e   :  { %v1282_v60 = vmul.f32 0.3275911, %v1278_v57  ;;  %v1279_v61 = vand.u32 2147483647, %v1267_v58  ;;  %v1330_v43 = vsub.f32 0.0, %v1278_v57  ;;  %vm1271_vm6 = vcmp.ge.f32.partialorder %v1267_v58, 0.0 }
 0x77f   :  { %v1275_v18 = vsel %vm1271_vm6, 1.0, %v2201_v33  ;;  %v2099_v58 = vld [vmem:[%s2778_s12 + $0xc8] ss:$16 sps:$4 sm:$0xff]   ;;  %v2104_v59 = vld [vmem:[%s2778_s12 + $0xac] ss:$16 sps:$4 sm:$0xff]  }
 0x780   :  { %v1286_v62 = vadd.f32 1.0, %v1282_v60  ;;  %v1283_v63 = vmul.f32 0.3275911, %v1279_v61  ;;  %v1331_v2 = vsub.f32 0.0, %v1279_v61  ;;  %v1334_v4 = vmul.f32 %v1330_v43, %v1278_v57  ;;  %v2101_v57 = vld [vmem:[%s2778_s12 + $0xcc] ss:$16 sps:$4 sm:$0xff]  }
 0x781   :  { %v2102_v60 = vld [vmem:[%s2778_s12 + $0xa8] ss:$16 sps:$4 sm:$0xff]  }
 0x782   :  { %2154 = vrcp.f32 %v1286_v62  ;;  %v1287_v1 = vadd.f32 1.0, %v1283_v63  ;;  %v1335_v5 = vmul.f32 %v1331_v2, %v1279_v61  ;;  %v1338_v36 = vmul.f32 1.442695, %v1334_v4  ;;  %v2107_v61 = vld [vmem:[%s2778_s12 + $0x8c] ss:$16 sps:$4 sm:$0xff]  }
 0x783   :  { %v2110_v62 = vld [vmem:[%s2778_s12 + $0x6c] ss:$16 sps:$4 sm:$0xff]   ;;  %v2108_v63 = vld [vmem:[%s2778_s12 + $0x68] ss:$16 sps:$4 sm:$0xff]  }
 0x784   :  { %2156 = vrcp.f32 %v1287_v1  ;;  %v1340_v11 = vmul.f32 1.442695, %v1335_v5  ;;  %v2113_v1 = vld [vmem:[%s2778_s12 + $0x4c] ss:$16 sps:$4 sm:$0xff]   ;;  %v2111_v43 = vld [vmem:[%s2778_s12 + $0x48] ss:$16 sps:$4 sm:$0xff]  }
 0x785   :  { %2158 = vpow2.f32 %v1338_v36  ;;  %v2116_v2 = vld [vmem:[%s2778_s12 + $0x2c] ss:$16 sps:$4 sm:$0xff]   ;;  %v2114_v4 = vld [vmem:[%s2778_s12 + $0x28] ss:$16 sps:$4 sm:$0xff]  }
 0x786   :  { %2160 = vpow2.f32 %v1340_v11  ;;  %v2117_v5 = vld [vmem:[%s2778_s12 + $0x8] ss:$16 sps:$4 sm:$0xff]   ;;  %v2126_v11 = vld [vmem:[%s2780_s14 + $0xe0] sm:$0xff]  }
 0x787   :  { %v2121_v36 = vld [vmem:[%s2780_s14 + $0xb8] sm:$0xff]  }
 0x78f   :  { %v2155_v45 = vpop.eup %2154 }
 0x790   :  { %v1294_v6 = vmul.f32 1.0614054, %v2155_v45 }
 0x791   :  { %v2157_v8 = vpop.eup %2156 }
 0x792   :  { %v1298_v9 = vadd.f32 -1.4531521, %v1294_v6  ;;  %v1295_v10 = vmul.f32 1.0614054, %v2157_v8  ;;  %v2159_v27 = vpop.eup %2158  ;;  %v2120_v6 = vld [vmem:[%s2780_s14 + $0xf8] sm:$0xff]  }
 0x793   :  { %v2161_v31 = vpop.eup %2160 }
 0x794   :  { %v1302_v12 = vmul.f32 %v2155_v45, %v1298_v9  ;;  %v1299_v13 = vadd.f32 -1.4531521, %v1295_v10  ;;  %v2123_v9 = vld [vmem:[%s2780_s14 + $0xb0] sm:$0xff]   ;;  %v2125_v10 = vld [vmem:[%s2780_s14 + $0xa8] sm:$0xff]  }
 0x796   :  { %v1306_v14 = vadd.f32 1.4214138, %v1302_v12  ;;  %v1303_v15 = vmul.f32 %v2157_v8, %v1299_v13  ;;  %v2127_v12 = vld [vmem:[%s2780_s14 + $0xa0] sm:$0xff]   ;;  %v2128_v13 = vld [vmem:[%s2780_s14 + $0xd8] sm:$0xff]  }
 0x798   :  { %v1310_v16 = vmul.f32 %v2155_v45, %v1306_v14  ;;  %v1307_v17 = vadd.f32 1.4214138, %v1303_v15  ;;  %v2129_v14 = vld [vmem:[%s2780_s14 + $0x98] sm:$0xff]   ;;  %v2130_v15 = vld [vmem:[%s2780_s14 + $0xd0] sm:$0xff]  }
 0x79a   :  { %v1314_v19 = vadd.f32 -0.28449672, %v1310_v16  ;;  %v1311_v20 = vmul.f32 %v2157_v8, %v1307_v17  ;;  %v2131_v16 = vld [vmem:[%s2780_s14 + $0x90] sm:$0xff]   ;;  %v2132_v17 = vld [vmem:[%s2780_s14 + $0xc8] sm:$0xff]  }
 0x79c   :  { %v1318_v23 = vmul.f32 %v2155_v45, %v1314_v19  ;;  %v1315_v24 = vadd.f32 -0.28449672, %v1311_v20  ;;  %v2133_v19 = vld [vmem:[%s2780_s14 + $0x88] sm:$0xff]   ;;  %v2134_v20 = vld [vmem:[%s2780_s14 + $0xc0] sm:$0xff]  }
 0x79e   :  { %v1322_v25 = vadd.f32 0.2548296, %v1318_v23  ;;  %v1319_v26 = vmul.f32 %v2157_v8, %v1315_v24  ;;  %v2135_v23 = vld [vmem:[%s2780_s14 + $0x80] sm:$0xff]  }
 0x7a0   :  { %v1326_v21 = vmul.f32 %v2155_v45, %v1322_v25  ;;  %v1323_v28 = vadd.f32 0.2548296, %v1319_v26  ;;  %v2119_v45 = vld [vmem:[%s2778_s12 + $0xc] ss:$16 sps:$4 sm:$0xff]  }
 0x7a2   :  { %v1346_v29 = vmul.f32 %v2159_v27, %v1326_v21  ;;  %v1327_v30 = vmul.f32 %v2157_v8, %v1323_v28  ;;  %v2122_v8 = vld [vmem:[%s2780_s14 + $0xf0] sm:$0xff]  }
 0x7a4   :  { %v1350_v32 = vsub.f32 1.0, %v1346_v29  ;;  %v1347_v35 = vmul.f32 %v2161_v31, %v1327_v30 }
 0x7a6   :  { %v1354_v37 = vmul.f32 %v1350_v32, %v1274_v34  ;;  %v1351_v38 = vsub.f32 1.0, %v1347_v35  ;;  %v1014_v32 = vsub.s32 3, %v2389_v42  ;;  %v1011_v34 = vrot.slane %v2636_v3, %v129_v0 }
 0x7a8   :  { %v1358_v39 = vadd.f32 1.0, %v1354_v37  ;;  %v1355_v40 = vmul.f32 %v1351_v38, %v1275_v18  ;;  %v1015_v35 = vrot.slane %v2636_v3, %v1014_v32  ;;  %v1807_v32 = vld [vmem:[%s2781_s15] ss:$0 sm:$0xff] }
 0x7aa   :  { %v1359_v46 = vadd.f32 1.0, %v1355_v40  ;;  %v1362_v47 = vmul.f32 %v1358_v39, %v1262_v41 }
 0x7ac   :  { %v1363_v48 = vmul.f32 %v1359_v46, %v1263_v44  ;;  %v1366_v50 = vpack.c.bf16 %v1362_v47, %v1362_v47 }
 0x7ae   :  { %v1367_v49 = vpack.c.bf16 %v1363_v48, %v1363_v48 }
 0x7b0   :  { %1665 = vmatprep.mubr.bf16.mxu1 %v1367_v49 }
 0x7b1   :  { %1666 = vmatmul.mubr.bf16.vlgmr.msra.gmra.mxu1 %v1366_v50 }
 0x7ba   :  { %v598_v51 = vpop.permute.xlu0 %597 }
 0x7bb   :  { %601 = vst.msk [vmem:[#allocation2] sm:$0xff] %vm600_vm7, %v598_v51 }
 0x7c2   :  { %v715_v53 = vpop.permute.xlu1 %714 }
 0x7c3   :  { %718 = vst.msk [vmem:[#allocation2] sm:$0xff] %vm717_vm8, %v715_v53 }
 0x7ca   :  { %v832_v54 = vpop.permute.xlu0 %831 }
 0x7cb   :  { %835 = vst.msk [vmem:[#allocation2] sm:$0xff] %vm834_vm9, %v832_v54 }
 0x7d2   :  { %v836_v55 = vld [vmem:[#allocation2] sm:$0xff] }
 0x7d3   :  { %v837_v56 = vpack.c.bf16 %v836_v55, %v836_v55 }
 0x7d5   :  { %2003 = vmatmul.mubr.bf16.vlgmr.msra.gmra.mxu0 %v837_v56 }
 0x7d6   :  { %1222 = vmatpush1.bf16.msra.mxu0 %v2096_v52  ;;  %1253 = vmatprep.mubr.bf16.mxu0 %v2194_v22  ;;  %v2105_v22 = vld [vmem:[%s2778_s12 + $0x88] ss:$16 sps:$4 sm:$0xff]  }
 0x7d7   :  { %1223 = vmatprep.subr.bf16.mxu0 %v2101_v57 }
 0x7da   :  { %1224 = vmatpush1.bf16.msra.mxu0 %v2099_v58 }
 0x7db   :  { %1225 = vmatprep.subr.bf16.mxu0 %v2104_v59 }
 0x7de   :  { %1226 = vmatpush1.bf16.msra.mxu0 %v2102_v60 }
 0x7df   :  { %1227 = vmatprep.subr.bf16.mxu0 %v2107_v61 }
 0x7e2   :  { %1228 = vmatpush1.bf16.msra.mxu0 %v2105_v22 }
 0x7e3   :  { %1229 = vmatprep.subr.bf16.mxu0 %v2110_v62 }
 0x7e6   :  { %1230 = vmatpush1.bf16.msra.mxu0 %v2108_v63 }
 0x7e7   :  { %1231 = vmatprep.subr.bf16.mxu0 %v2113_v1 }
 0x7ea   :  { %1232 = vmatpush1.bf16.msra.mxu0 %v2111_v43 }
 0x7eb   :  { %1233 = vmatprep.subr.bf16.mxu0 %v2116_v2 }
 0x7ee   :  { %1234 = vmatpush1.bf16.msra.mxu0 %v2114_v4 }
 0x7ef   :  { %1235 = vmatprep.subr.bf16.mxu0 %v2119_v45 }
 0x7f2   :  { %1236 = vmatpush1.bf16.msra.mxu0 %v2117_v5 }
 0x7f3   :  { %1896 = vmatprep.subr.bf16.mxu0 %v2120_v6 }
 0x7f5   :  { %1254 = vmatmul.mubr.bf16.vlgmr.msra.gmra.mxu0 %v2545_v7  ;;  %v2124_v7 = vld [vmem:[%s2780_s14 + $0xe8] sm:$0xff]  }
 0x7f6   :  { %1897 = vmatpush3.bf16.msra.mxu0 %v2121_v36 }
 0x7f7   :  { %1898 = vmatprep.subr.bf16.mxu0 %v2122_v8 }
 0x7fa   :  { %1899 = vmatpush3.bf16.msra.mxu0 %v2123_v9 }
 0x7fb   :  { %1900 = vmatprep.subr.bf16.mxu0 %v2124_v7 }
 0x7fe   :  { %1901 = vmatpush3.bf16.msra.mxu0 %v2125_v10 }
 0x7ff   :  { %1902 = vmatprep.subr.bf16.mxu0 %v2126_v11 }
 0x802   :  { %1903 = vmatpush3.bf16.msra.mxu0 %v2127_v12 }
 0x803   :  { %1904 = vmatprep.subr.bf16.mxu0 %v2128_v13 }
 0x806   :  { %1905 = vmatpush3.bf16.msra.mxu0 %v2129_v14 }
 0x807   :  { %1906 = vmatprep.subr.bf16.mxu0 %v2130_v15 }
 0x80a   :  { %1907 = vmatpush3.bf16.msra.mxu0 %v2131_v16 }
 0x80b   :  { %1908 = vmatprep.subr.bf16.mxu0 %v2132_v17 }
 0x80e   :  { %1909 = vmatpush3.bf16.msra.mxu0 %v2133_v19 }
 0x80f   :  { %1910 = vmatprep.subr.bf16.mxu0 %v2134_v20 }
 0x812   :  { %1911 = vmatpush3.bf16.msra.mxu0 %v2135_v23 }
 0x871   :  { %v1890_v24 = vpop.f32.mrf.mxu1 }
 0x873   :  { %v1891_v25 = vpop.f32.mrf.mxu1 }
 0x874   :  { %v2741_v26 = vadd.f32 %v1891_v25, %v1890_v24 }
 0x875   :  { %v1893_v21 = vpop.f32.mrf.mxu1 }
 0x877   :  { %v1894_v27 = vpop.f32.mrf.mxu1 }
 0x895   :  { %v2743_v28 = vpop.f32.mrf.mxu0 }
 0x897   :  { %v2004_v29 = vpop.f32.mrf.mxu0 }
 0x899   :  { %v946_v30 = vpop.f32.mrf.mxu0 }
 0x89b   :  { %v2005_v31 = vpop.f32.mrf.mxu0 }
 0x8b5   :  { %v1255_v37 = vpop.f32.mrf.mxu0 }
 0x8b6   :  { %v1256_v38 = vadd.f32 %v1255_v37, %v1011_v34  ;;  %v1668_v37 = vadd.f32 %v2741_v26, %v1807_v32 }
 0x8b7   :  { %v1257_v39 = vpop.f32.mrf.mxu0 }
 0x8b8   :  { %v1268_v18 = vmul.f32 0.70710677, %v1256_v38  ;;  %v1258_v40 = vadd.f32 %v1257_v39, %v1015_v35  ;;  %v1264_v24 = vmul.f32 0.5, %v1256_v38  ;;  %v1764_v35 = vld [vmem:[%s2777_s11] ss:$0 sm:$0xff]  ;;  %s2171_s11 = scalar_lea.vmem %s1723_s26, 128 }
 0x8b9   :  { %v1259_v41 = vpop.f32.mrf.mxu0  ;;  %p2172_p0 = scmp.ne.s32.totalorder %s1723_s26, %s2171_s11  ;;  %p2177_p2 = scmp.lt.s32.totalorder %s2171_s11, %s2171_s11 }
 0x8ba   :  { %v1280_v44 = vand.u32 2147483647, %v1268_v18  ;;  %v1269_v46 = vmul.f32 0.70710677, %v1258_v40  ;;  %vm1272_vm10 = vcmp.ge.f32.partialorder %v1268_v18, 0.0  ;;  %v1265_v25 = vmul.f32 0.5, %v1258_v40 }
 0x8bb   :  { %v1260_v47 = vpop.f32.mrf.mxu0  ;;  %v1276_v14 = vsel %vm1272_vm10, 1.0, %v2201_v33  ;;  %v944_v18 = vadd.f32 %v1764_v35, %v2743_v28  ;;  %p2178_p3 = por %p2177_p2, %p2176_p1 }
 0x8bc   :  { %v1284_v48 = vmul.f32 0.3275911, %v1280_v44  ;;  %v1281_v49 = vand.u32 2147483647, %v1269_v46  ;;  %v1332_v42 = vsub.f32 0.0, %v1280_v44  ;;  %vm1273_vm11 = vcmp.ge.f32.partialorder %v1269_v46, 0.0 }
 0x8bd   :  { %v1277_v20 = vsel %vm1273_vm11, 1.0, %v2201_v33  ;;  %v2170_v46 = vld [vmem:[%s2785_s23] sm:$0xff]  ;;  %p2179_p4 = pnand %p2178_p3, %p2172_p0 }
 0x8be   :  { %v1288_v50 = vadd.f32 1.0, %v1284_v48  ;;  %v1285_v51 = vmul.f32 0.3275911, %v1281_v49  ;;  %v1333_v0 = vsub.f32 0.0, %v1281_v49  ;;  %v1336_v54 = vmul.f32 %v1332_v42, %v1280_v44 }
 0x8c0   :  { %2162 = vrcp.f32 %v1288_v50  ;;  %v1289_v53 = vadd.f32 1.0, %v1285_v51  ;;  %v1337_v52 = vmul.f32 %v1333_v0, %v1281_v49  ;;  %v1342_v56 = vmul.f32 1.442695, %v1336_v54 }
 0x8c2   :  { %2164 = vrcp.f32 %v1289_v53  ;;  %v1344_v60 = vmul.f32 1.442695, %v1337_v52 }
 0x8c3   :  { %2166 = vpow2.f32 %v1342_v56 }
 0x8c4   :  { %2168 = vpow2.f32 %v1344_v60 }
 0x8cd   :  { %v2163_v3 = vpop.eup %2162 }
 0x8ce   :  { %v1296_v55 = vmul.f32 1.0614054, %v2163_v3 }
 0x8cf   :  { %v2165_v57 = vpop.eup %2164 }
 0x8d0   :  { %v1300_v58 = vadd.f32 -1.4531521, %v1296_v55  ;;  %v1297_v59 = vmul.f32 1.0614054, %v2165_v57  ;;  %v2167_v9 = vpop.eup %2166 }
 0x8d1   :  { %v2169_v12 = vpop.eup %2168 }
 0x8d2   :  { %v1304_v61 = vmul.f32 %v2163_v3, %v1300_v58  ;;  %v1301_v22 = vadd.f32 -1.4531521, %v1297_v59 }
 0x8d4   :  { %v1308_v62 = vadd.f32 1.4214138, %v1304_v61  ;;  %v1305_v63 = vmul.f32 %v2165_v57, %v1301_v22 }
 0x8d6   :  { %v1312_v1 = vmul.f32 %v2163_v3, %v1308_v62  ;;  %v1309_v43 = vadd.f32 1.4214138, %v1305_v63 }
 0x8d8   :  { %v1316_v2 = vadd.f32 -0.28449672, %v1312_v1  ;;  %v1313_v4 = vmul.f32 %v2165_v57, %v1309_v43 }
 0x8da   :  { %v1320_v45 = vmul.f32 %v2163_v3, %v1316_v2  ;;  %v1317_v5 = vadd.f32 -0.28449672, %v1313_v4 }
 0x8dc   :  { %v1324_v6 = vadd.f32 0.2548296, %v1320_v45  ;;  %v1321_v36 = vmul.f32 %v2165_v57, %v1317_v5 }
 0x8de   :  { %v1328_v8 = vmul.f32 %v2163_v3, %v1324_v6  ;;  %v1325_v7 = vadd.f32 0.2548296, %v1321_v36 }
 0x8e0   :  { %v1348_v10 = vmul.f32 %v2167_v9, %v1328_v8  ;;  %v1329_v11 = vmul.f32 %v2165_v57, %v1325_v7 }
 0x8e2   :  { %v1352_v13 = vsub.f32 1.0, %v1348_v10  ;;  %v1349_v15 = vmul.f32 %v2169_v12, %v1329_v11 }
 0x8e4   :  { %v1356_v16 = vmul.f32 %v1352_v13, %v1276_v14  ;;  %v1353_v17 = vsub.f32 1.0, %v1349_v15 }
 0x8e6   :  { %v1360_v19 = vadd.f32 1.0, %v1356_v16  ;;  %v1357_v23 = vmul.f32 %v1353_v17, %v1277_v20 }
 0x8e8   :  { %v1361_v21 = vadd.f32 1.0, %v1357_v23  ;;  %v1364_v27 = vmul.f32 %v1360_v19, %v1264_v24 }
 0x8ea   :  { %v1365_v29 = vmul.f32 %v1361_v21, %v1265_v25  ;;  %v1368_v31 = vpack.c.bf16 %v1364_v27, %v1364_v27 }
 0x8ec   :  { %v1369_v30 = vpack.c.bf16 %v1365_v29, %v1365_v29 }
 0x8ee   :  { %1705 = vmatprep.mubr.bf16.mxu0 %v1369_v30 }
 0x8ef   :  { %1706 = vmatmul.mubr.bf16.vlgmr.msra.gmra.mxu0 %v1368_v31 }
 0x9af   :  { %v1912_v34 = vpop.f32.mrf.mxu0 }
 0x9b1   :  { %v1913_v33 = vpop.f32.mrf.mxu0 }
 0x9b2   :  { %v1914_v38 = vadd.f32 %v1913_v33, %v1912_v34 }
 0x9b3   :  { %v1915_v39 = vpop.f32.mrf.mxu0 }
 0x9b4   :  { %v1708_v40 = vadd.f32 %v1914_v38, %v1668_v37 }
 0x9b5   :  { %v1916_v41 = vpop.f32.mrf.mxu0 }
 0x9b6   :  { %v1713_v44 = vadd.f32 %v1708_v40, %v944_v18 }
 0x9b8   :  { %v1714_v47 = vadd.f32 %v2170_v46, %v1713_v44 }
 0x9ba   :  { %1715 = vst [vmem:[#allocation3] sm:$0xff] %v1714_v47 }
 0x9bb   :  { %2182 = shalt.err (!%p2179_p4)
}
 0x9bc   :  { %1725 = dma.vmem_to_hbm [thread:$0]  %s1723_s26, 128, %s2782_s16, [#allocation4]  }
 0x9bd   :  { %2191 = dma.done.wait [#allocation4], 128  }
 0x9be   :  { %2192 = vsyncadd [#allocation4], 4294967168 }
 0x9bf   :  { %1729 = vsyncpa [#allocation4], 1 }

</bundles_post_ra>
